<compile_context>
chip_gen: v7x
topology: tpu7x:2x2x1
jax: 0.10.0
libtpu: 0.0.40
codegen_flags: <defaults>
</compile_context>

<pallas_src>
import jax
import jax.numpy as jnp
import numpy as np
from jax.experimental import pallas as pl
from jax.experimental.pallas import tpu as pltpu


def attention_model_forward(wrf, h, c, params):
    wrf = jnp.asarray(wrf, jnp.float32)
    h = jnp.asarray(h, jnp.float32)
    c = jnp.asarray(c, jnp.float32)
    B, C, H, W = wrf.shape
    assert H % 4 == 0 and W % 4 == 0
    Hq, Wq = H // 4, W // 4
    assert h.shape == (B, 32, Hq, Wq) and c.shape == (B, 32, Hq, Wq)

    # ---- lane-packed geometry --------------------------------------------
    # channel k owns lanes [k*S, (k+1)*S): [2 zeros | W data | S-W-2 zeros].
    S = W + 4
    extra = (-(C * S)) % 128
    if extra and extra % C == 0:
        S += extra // C              # e.g. C=4, W=16 -> S=32, C*S=128 lanes
    LT = C * S
    HP = H + 4                       # padded rows fed to conv #1
    QR = H + 8                       # scratch rows (zero ring for conv #2)

    # ---- host-side constant tables (hoisted out of the kernel) ------------
    lane = np.arange(LT)
    seg = lane // S
    off = lane % S
    lvl1 = ((off >= 2) & (off < 2 + W)).astype(np.float32)     # conv1 data lanes
    lvl2 = lvl1 * ((off - 2) % 2 == 0)                         # after pool1 (stride 2)
    lvl3 = lvl1 * ((off - 2) % 4 == 0)                         # after pool2 (stride 4)

    w1 = jnp.asarray(params["w1"], jnp.float32).reshape(C, 25)
    b1 = jnp.asarray(params["b1"], jnp.float32).reshape(C)
    w2 = jnp.asarray(params["w2"], jnp.float32).reshape(C, 25)
    b2 = jnp.asarray(params["b2"], jnp.float32).reshape(C)
    w3 = jnp.asarray(params["w3"], jnp.float32).reshape(C)
    b3 = jnp.asarray(params["b3"], jnp.float32).reshape(C)
    whw = jnp.asarray(params["hw_w"], jnp.float32).reshape(64)
    bhw = jnp.asarray(params["hw_b"], jnp.float32).reshape(())

    wrow1 = jnp.asarray(w1[seg, :].T * lvl1[None, :], jnp.float32)   # (25, LT)
    brow1 = jnp.asarray((b1[seg] * lvl1)[None, :], jnp.float32)      # (1, LT)
    wrow2 = jnp.asarray(w2[seg, :].T * lvl2[None, :], jnp.float32)   # (25, LT)
    brow2 = jnp.asarray((b2[seg] * lvl2)[None, :], jnp.float32)
    w3row = jnp.asarray(w3[seg][None, :], jnp.float32)               # (1, LT)
    b3row = jnp.asarray(b3[seg][None, :], jnp.float32)

    # CNN_hw 1x1 conv fused with the scatter of its output onto the pooled
    # (rows 4*i, lanes k*S+2+4*j) positions of every channel segment.
    j3_of = (off - 2) // 4
    sel3 = (lvl3[None, :] *
            (j3_of[None, :] == np.arange(Wq)[:, None])).astype(np.float32)   # (Wq, LT)
    wexp = jnp.asarray((whw[None, :, None] * sel3[:, None, :]).reshape(Wq * 64, LT),
                       jnp.float32)                                           # (Wq*64, LT)
    validmask = ((np.arange(H) % 4 == 0).astype(np.float32)[:, None] * lvl3[None, :])
    ahcb = jnp.asarray(bhw * validmask, jnp.float32)                          # (H, LT)

    # per-segment sum matrix (includes the 1/Wq logit normalisation)
    gseg = jnp.asarray((seg[:, None] == seg[None, :]).astype(np.float32) / float(Wq),
                       jnp.float32)                                           # (LT, LT)

    # ---- wrapper-side repacking (layout plumbing only) ---------------------
    p1 = jnp.pad(wrf, ((0, 0), (0, 0), (2, 2), (2, S - W - 2)))
    p1 = p1.transpose(0, 2, 1, 3).reshape(B, HP, LT)                 # (B, H+4, C*S)

    hc = jnp.concatenate([h, c], axis=1)                             # (B, 64, Hq, Wq)
    hc = hc.transpose(0, 2, 3, 1).reshape(B, Hq, Wq * 64)
    hs = jnp.pad(hc[:, :, None, :], ((0, 0), (0, 0), (0, 3), (0, 0)))
    hs = hs.reshape(B, H, Wq * 64)                                   # data on rows 4*i

    hi = jax.lax.Precision.HIGHEST   # only two tiny dots use the MXU

    def kernel(p1_ref, hs_ref, w1_ref, b1_ref, w2_ref, b2_ref,
               w3_ref, b3_ref, wexp_ref, ahcb_ref, gseg_ref,
               out_ref, q_ref):
        f32 = jnp.float32

        # depthwise 5x5 conv #1: 25 taps = lane roll (XLU) + madd (VPU)
        acc = jnp.zeros((H, LT), f32)
        for ky in range(5):
            row = p1_ref[ky:ky + H, :]
            for kx in range(5):
                sh = row if kx == 2 else pltpu.roll(row, shift=(2 - kx) % LT, axis=1)
                acc = acc + w1_ref[ky * 5 + kx:ky * 5 + kx + 1, :] * sh
        y1 = jnp.maximum(acc + b1_ref[...], 0.0)        # exactly 0 off the data lanes

        # 2x2 max-pool #1: pairwise max on VPU, shifts on XLU; pooled values
        # stay in place on even rows / stride-2 lanes.
        pm = jnp.maximum(y1, pltpu.roll(y1, shift=LT - 1, axis=1))
        hm = jnp.maximum(pm, pltpu.roll(pm, shift=H - 1, axis=0))

        # zero ring of rows for conv #2 (interior is fully overwritten)
        q_ref[0:4, :] = jnp.zeros((4, LT), f32)
        q_ref[4:4 + H, :] = hm
        q_ref[4 + H:8 + H, :] = jnp.zeros((4, LT), f32)

        # depthwise 5x5 conv #2 on the stride-2 grid (2-lane / 2-row shifts)
        acc2 = jnp.zeros((H, LT), f32)
        for dy in range(5):
            row = q_ref[2 * dy:2 * dy + H, :]
            for dx in range(5):
                sh = row if dx == 2 else pltpu.roll(
                    row, shift=(-2 * (dx - 2)) % LT, axis=1)
                acc2 = acc2 + w2_ref[dy * 5 + dx:dy * 5 + dx + 1, :] * sh
        y2 = jnp.maximum(acc2 + b2_ref[...], 0.0)

        # 2x2 max-pool #2 (stride 2 -> stride 4 positions)
        pm2 = jnp.maximum(y2, pltpu.roll(y2, shift=LT - 2, axis=1))
        hm2 = jnp.maximum(pm2, pltpu.roll(pm2, shift=H - 2, axis=0))

        # CNN_hw 1x1 conv + scatter in one small MXU dot; it is zero off the
        # valid (Hq x Wq) positions, masking out the garbage lanes/rows of hm2.
        ahc = jnp.dot(hs_ref[...], wexp_ref[...],
                      preferred_element_type=f32, precision=hi) + ahcb_ref[...]
        att = ahc * (hm2 * w3_ref[...] + b3_ref[...])
        colsum = jnp.sum(att, axis=0, keepdims=True)                  # (1, LT)
        # per-channel logit (already / Wq), replicated over each segment
        e_row = jnp.dot(colsum, gseg_ref[...],
                        preferred_element_type=f32, precision=hi)     # (1, LT)

        # channel softmax, vectorised along lanes (segments are constant,
        # so the lane sum equals S * sum_k exp(e_k - max)).
        m = jnp.max(e_row, axis=1, keepdims=True)
        ex = jnp.exp(e_row - m)
        ssum = jnp.sum(ex, axis=1, keepdims=True)
        alpha = ex * (jnp.float32(S) / ssum)

        # lane-dense scale + store of the (padded, packed) input
        out_ref[...] = p1_ref[...] * alpha

    def const_spec(a):
        nd = a.ndim
        return pl.BlockSpec(a.shape, lambda b: (0,) * nd)

    out_pad = pl.pallas_call(
        kernel,
        out_shape=jax.ShapeDtypeStruct((B, HP, LT), jnp.float32),
        grid=(B,),
        in_specs=[
            pl.BlockSpec((None, HP, LT), lambda b: (b, 0, 0)),
            pl.BlockSpec((None, H, Wq * 64), lambda b: (b, 0, 0)),
            const_spec(wrow1), const_spec(brow1),
            const_spec(wrow2), const_spec(brow2),
            const_spec(w3row), const_spec(b3row),
            const_spec(wexp), const_spec(ahcb), const_spec(gseg),
        ],
        out_specs=pl.BlockSpec((None, HP, LT), lambda b: (b, 0, 0)),
        scratch_shapes=[pltpu.VMEM((QR, LT), jnp.float32)],
        compiler_params=pltpu.CompilerParams(
            dimension_semantics=("parallel",)),
    )(p1, hs, wrow1, brow1, wrow2, brow2, w3row, b3row, wexp, ahcb, gseg)

    out = out_pad.reshape(B, HP, C, S)[:, 2:2 + H, :, 2:2 + W]
    return out.transpose(0, 2, 1, 3)


def reference_forward(wrf, h, c, p):
    """Pure-JAX reference mirroring the PyTorch module."""
    C = wrf.shape[1]
    hi = jax.lax.Precision.HIGHEST

    def dwconv(x, w, b):
        y = jax.lax.conv_general_dilated(
            x, w, window_strides=(1, 1), padding=((2, 2), (2, 2)),
            feature_group_count=C,
            dimension_numbers=("NCHW", "OIHW", "NCHW"), precision=hi)
        return y + b.reshape(1, C, 1, 1)

    def maxpool(x):
        return jax.lax.reduce_window(x, -jnp.inf, jax.lax.max,
                                     (1, 1, 2, 2), (1, 1, 2, 2), "VALID")

    y = jax.nn.relu(dwconv(wrf, p["w1"], p["b1"]))
    y = maxpool(y)
    y = jax.nn.relu(dwconv(y, p["w2"], p["b2"]))
    y = maxpool(y)
    att_wrf = y * p["w3"].reshape(1, C, 1, 1) + p["b3"].reshape(1, C, 1, 1)

    hc = jnp.concatenate([h, c], axis=1)
    att_hc = jnp.einsum("bkhw,ok->bohw", hc, p["hw_w"].reshape(1, 64),
                        precision=hi) + p["hw_b"].reshape(1, 1, 1, 1)
    att = att_hc * att_wrf
    e = jnp.sum(att, axis=(2, 3), keepdims=True) / att_wrf.shape[3]
    alpha = jax.nn.softmax(e, axis=1)
    return wrf * alpha


if __name__ == "__main__":
    B, C, H, W = 2, 4, 16, 16
    Hq, Wq = H // 4, W // 4

    key = jax.random.PRNGKey(0)
    ks = jax.random.split(key, 11)
    wrf = jax.random.normal(ks[0], (B, C, H, W), dtype=jnp.float32)
    h = jax.random.normal(ks[1], (B, 32, Hq, Wq), dtype=jnp.float32)
    c = jax.random.normal(ks[2], (B, 32, Hq, Wq), dtype=jnp.float32)

    s = 0.1
    params = {
        "w1": s * jax.random.normal(ks[3], (C, 1, 5, 5), jnp.float32),
        "b1": s * jax.random.normal(ks[4], (C,), jnp.float32),
        "w2": s * jax.random.normal(ks[5], (C, 1, 5, 5), jnp.float32),
        "b2": s * jax.random.normal(ks[6], (C,), jnp.float32),
        "w3": s * jax.random.normal(ks[7], (C, 1, 1, 1), jnp.float32),
        "b3": s * jax.random.normal(ks[8], (C,), jnp.float32),
        "hw_w": s * jax.random.normal(ks[9], (1, 64, 1, 1), jnp.float32),
        "hw_b": s * jax.random.normal(ks[10], (1,), jnp.float32),
    }

    out = attention_model_forward(wrf, h, c, params)
    jax.block_until_ready(out)

    ref = reference_forward(wrf, h, c, params)
    np.testing.assert_allclose(np.asarray(out), np.asarray(ref),
                               rtol=1e-3, atol=1e-3)
    print("KERNEL_OK")
</pallas_src>

<mosaic_0001>
module attributes {stable_mosaic.version = 11 : i64} {
  func.func @kernel(%arg0: i32, %arg1: memref<1x20x128xf32, #tpu.memory_space<vmem>>, %arg2: memref<1x16x256xf32, #tpu.memory_space<vmem>>, %arg3: memref<25x128xf32, #tpu.memory_space<vmem>>, %arg4: memref<1x128xf32, #tpu.memory_space<vmem>>, %arg5: memref<25x128xf32, #tpu.memory_space<vmem>>, %arg6: memref<1x128xf32, #tpu.memory_space<vmem>>, %arg7: memref<1x128xf32, #tpu.memory_space<vmem>>, %arg8: memref<1x128xf32, #tpu.memory_space<vmem>>, %arg9: memref<256x128xf32, #tpu.memory_space<vmem>>, %arg10: memref<16x128xf32, #tpu.memory_space<vmem>>, %arg11: memref<128x128xf32, #tpu.memory_space<vmem>>, %arg12: memref<1x20x128xf32, #tpu.memory_space<vmem>>, %arg13: memref<24x128xf32, #tpu.memory_space<vmem>>) attributes {dimension_semantics = [#tpu.dimension_semantics<parallel>], iteration_bounds = array<i64: 2>, scalar_prefetch = 0 : i64, scratch_operands = 1 : i64, tpu.core_type = #tpu.core_type<tc>, window_params = [{transform_indices = @transform_0, window_bounds = array<i64: 1, 20, 128>}, {transform_indices = @transform_1, window_bounds = array<i64: 1, 16, 256>}, {pipeline_mode = #tpu.pipeline_mode<synchronous>, transform_indices = @transform_2, window_bounds = array<i64: 25, 128>}, {pipeline_mode = #tpu.pipeline_mode<synchronous>, transform_indices = @transform_3, window_bounds = array<i64: 1, 128>}, {pipeline_mode = #tpu.pipeline_mode<synchronous>, transform_indices = @transform_4, window_bounds = array<i64: 25, 128>}, {pipeline_mode = #tpu.pipeline_mode<synchronous>, transform_indices = @transform_5, window_bounds = array<i64: 1, 128>}, {pipeline_mode = #tpu.pipeline_mode<synchronous>, transform_indices = @transform_6, window_bounds = array<i64: 1, 128>}, {pipeline_mode = #tpu.pipeline_mode<synchronous>, transform_indices = @transform_7, window_bounds = array<i64: 1, 128>}, {pipeline_mode = #tpu.pipeline_mode<synchronous>, transform_indices = @transform_8, window_bounds = array<i64: 256, 128>}, {pipeline_mode = #tpu.pipeline_mode<synchronous>, transform_indices = @transform_9, window_bounds = array<i64: 16, 128>}, {pipeline_mode = #tpu.pipeline_mode<synchronous>, transform_indices = @transform_10, window_bounds = array<i64: 128, 128>}, {transform_indices = @transform_11, window_bounds = array<i64: 1, 20, 128>}]} {
    %cst = arith.constant 0.000000e+00 : f32
    %0 = vector.broadcast %cst : f32 to vector<16x128xf32>
    %c0 = arith.constant 0 : index
    %c0_0 = arith.constant 0 : index
    %c0_1 = arith.constant 0 : index
    %1 = vector.load %arg1[%c0, %c0_0, %c0_1] : memref<1x20x128xf32, #tpu.memory_space<vmem>>, vector<1x16x128xf32>
    %2 = vector.shape_cast %1 : vector<1x16x128xf32> to vector<16x128xf32>
    %c2_i32 = arith.constant 2 : i32
    %3 = tpu.dynamic_rotate %2 by %c2_i32 dim 1 : vector<16x128xf32>, i32 -> vector<16x128xf32>
    %c0_2 = arith.constant 0 : index
    %c0_3 = arith.constant 0 : index
    %4 = vector.load %arg3[%c0_2, %c0_3] : memref<25x128xf32, #tpu.memory_space<vmem>>, vector<1x128xf32>
    %5 = vector.broadcast %4 : vector<1x128xf32> to vector<16x128xf32>
    %6 = arith.mulf %5, %3 : vector<16x128xf32>
    %7 = arith.addf %0, %6 : vector<16x128xf32>
    %c1_i32 = arith.constant 1 : i32
    %8 = tpu.dynamic_rotate %2 by %c1_i32 dim 1 : vector<16x128xf32>, i32 -> vector<16x128xf32>
    %c1 = arith.constant 1 : index
    %c0_4 = arith.constant 0 : index
    %9 = vector.load %arg3[%c1, %c0_4] : memref<25x128xf32, #tpu.memory_space<vmem>>, vector<1x128xf32>
    %10 = vector.broadcast %9 : vector<1x128xf32> to vector<16x128xf32>
    %11 = arith.mulf %10, %8 : vector<16x128xf32>
    %12 = arith.addf %7, %11 : vector<16x128xf32>
    %c2 = arith.constant 2 : index
    %c0_5 = arith.constant 0 : index
    %13 = vector.load %arg3[%c2, %c0_5] : memref<25x128xf32, #tpu.memory_space<vmem>>, vector<1x128xf32>
    %14 = vector.broadcast %13 : vector<1x128xf32> to vector<16x128xf32>
    %15 = arith.mulf %14, %2 : vector<16x128xf32>
    %16 = arith.addf %12, %15 : vector<16x128xf32>
    %c127_i32 = arith.constant 127 : i32
    %17 = tpu.dynamic_rotate %2 by %c127_i32 dim 1 : vector<16x128xf32>, i32 -> vector<16x128xf32>
    %c3 = arith.constant 3 : index
    %c0_6 = arith.constant 0 : index
    %18 = vector.load %arg3[%c3, %c0_6] : memref<25x128xf32, #tpu.memory_space<vmem>>, vector<1x128xf32>
    %19 = vector.broadcast %18 : vector<1x128xf32> to vector<16x128xf32>
    %20 = arith.mulf %19, %17 : vector<16x128xf32>
    %21 = arith.addf %16, %20 : vector<16x128xf32>
    %c126_i32 = arith.constant 126 : i32
    %22 = tpu.dynamic_rotate %2 by %c126_i32 dim 1 : vector<16x128xf32>, i32 -> vector<16x128xf32>
    %c4 = arith.constant 4 : index
    %c0_7 = arith.constant 0 : index
    %23 = vector.load %arg3[%c4, %c0_7] : memref<25x128xf32, #tpu.memory_space<vmem>>, vector<1x128xf32>
    %24 = vector.broadcast %23 : vector<1x128xf32> to vector<16x128xf32>
    %25 = arith.mulf %24, %22 : vector<16x128xf32>
    %26 = arith.addf %21, %25 : vector<16x128xf32>
    %c0_8 = arith.constant 0 : index
    %c1_9 = arith.constant 1 : index
    %c0_10 = arith.constant 0 : index
    %27 = vector.load %arg1[%c0_8, %c1_9, %c0_10] : memref<1x20x128xf32, #tpu.memory_space<vmem>>, vector<1x16x128xf32>
    %28 = vector.shape_cast %27 : vector<1x16x128xf32> to vector<16x128xf32>
    %c2_i32_11 = arith.constant 2 : i32
    %29 = tpu.dynamic_rotate %28 by %c2_i32_11 dim 1 : vector<16x128xf32>, i32 -> vector<16x128xf32>
    %c5 = arith.constant 5 : index
    %c0_12 = arith.constant 0 : index
    %30 = vector.load %arg3[%c5, %c0_12] : memref<25x128xf32, #tpu.memory_space<vmem>>, vector<1x128xf32>
    %31 = vector.broadcast %30 : vector<1x128xf32> to vector<16x128xf32>
    %32 = arith.mulf %31, %29 : vector<16x128xf32>
    %33 = arith.addf %26, %32 : vector<16x128xf32>
    %c1_i32_13 = arith.constant 1 : i32
    %34 = tpu.dynamic_rotate %28 by %c1_i32_13 dim 1 : vector<16x128xf32>, i32 -> vector<16x128xf32>
    %c6 = arith.constant 6 : index
    %c0_14 = arith.constant 0 : index
    %35 = vector.load %arg3[%c6, %c0_14] : memref<25x128xf32, #tpu.memory_space<vmem>>, vector<1x128xf32>
    %36 = vector.broadcast %35 : vector<1x128xf32> to vector<16x128xf32>
    %37 = arith.mulf %36, %34 : vector<16x128xf32>
    %38 = arith.addf %33, %37 : vector<16x128xf32>
    %c7 = arith.constant 7 : index
    %c0_15 = arith.constant 0 : index
    %39 = vector.load %arg3[%c7, %c0_15] : memref<25x128xf32, #tpu.memory_space<vmem>>, vector<1x128xf32>
    %40 = vector.broadcast %39 : vector<1x128xf32> to vector<16x128xf32>
    %41 = arith.mulf %40, %28 : vector<16x128xf32>
    %42 = arith.addf %38, %41 : vector<16x128xf32>
    %c127_i32_16 = arith.constant 127 : i32
    %43 = tpu.dynamic_rotate %28 by %c127_i32_16 dim 1 : vector<16x128xf32>, i32 -> vector<16x128xf32>
    %c8 = arith.constant 8 : index
    %c0_17 = arith.constant 0 : index
    %44 = vector.load %arg3[%c8, %c0_17] : memref<25x128xf32, #tpu.memory_space<vmem>>, vector<1x128xf32>
    %45 = vector.broadcast %44 : vector<1x128xf32> to vector<16x128xf32>
    %46 = arith.mulf %45, %43 : vector<16x128xf32>
    %47 = arith.addf %42, %46 : vector<16x128xf32>
    %c126_i32_18 = arith.constant 126 : i32
    %48 = tpu.dynamic_rotate %28 by %c126_i32_18 dim 1 : vector<16x128xf32>, i32 -> vector<16x128xf32>
    %c9 = arith.constant 9 : index
    %c0_19 = arith.constant 0 : index
    %49 = vector.load %arg3[%c9, %c0_19] : memref<25x128xf32, #tpu.memory_space<vmem>>, vector<1x128xf32>
    %50 = vector.broadcast %49 : vector<1x128xf32> to vector<16x128xf32>
    %51 = arith.mulf %50, %48 : vector<16x128xf32>
    %52 = arith.addf %47, %51 : vector<16x128xf32>
    %c0_20 = arith.constant 0 : index
    %c2_21 = arith.constant 2 : index
    %c0_22 = arith.constant 0 : index
    %53 = vector.load %arg1[%c0_20, %c2_21, %c0_22] : memref<1x20x128xf32, #tpu.memory_space<vmem>>, vector<1x16x128xf32>
    %54 = vector.shape_cast %53 : vector<1x16x128xf32> to vector<16x128xf32>
    %c2_i32_23 = arith.constant 2 : i32
    %55 = tpu.dynamic_rotate %54 by %c2_i32_23 dim 1 : vector<16x128xf32>, i32 -> vector<16x128xf32>
    %c10 = arith.constant 10 : index
    %c0_24 = arith.constant 0 : index
    %56 = vector.load %arg3[%c10, %c0_24] : memref<25x128xf32, #tpu.memory_space<vmem>>, vector<1x128xf32>
    %57 = vector.broadcast %56 : vector<1x128xf32> to vector<16x128xf32>
    %58 = arith.mulf %57, %55 : vector<16x128xf32>
    %59 = arith.addf %52, %58 : vector<16x128xf32>
    %c1_i32_25 = arith.constant 1 : i32
    %60 = tpu.dynamic_rotate %54 by %c1_i32_25 dim 1 : vector<16x128xf32>, i32 -> vector<16x128xf32>
    %c11 = arith.constant 11 : index
    %c0_26 = arith.constant 0 : index
    %61 = vector.load %arg3[%c11, %c0_26] : memref<25x128xf32, #tpu.memory_space<vmem>>, vector<1x128xf32>
    %62 = vector.broadcast %61 : vector<1x128xf32> to vector<16x128xf32>
    %63 = arith.mulf %62, %60 : vector<16x128xf32>
    %64 = arith.addf %59, %63 : vector<16x128xf32>
    %c12 = arith.constant 12 : index
    %c0_27 = arith.constant 0 : index
    %65 = vector.load %arg3[%c12, %c0_27] : memref<25x128xf32, #tpu.memory_space<vmem>>, vector<1x128xf32>
    %66 = vector.broadcast %65 : vector<1x128xf32> to vector<16x128xf32>
    %67 = arith.mulf %66, %54 : vector<16x128xf32>
    %68 = arith.addf %64, %67 : vector<16x128xf32>
    %c127_i32_28 = arith.constant 127 : i32
    %69 = tpu.dynamic_rotate %54 by %c127_i32_28 dim 1 : vector<16x128xf32>, i32 -> vector<16x128xf32>
    %c13 = arith.constant 13 : index
    %c0_29 = arith.constant 0 : index
    %70 = vector.load %arg3[%c13, %c0_29] : memref<25x128xf32, #tpu.memory_space<vmem>>, vector<1x128xf32>
    %71 = vector.broadcast %70 : vector<1x128xf32> to vector<16x128xf32>
    %72 = arith.mulf %71, %69 : vector<16x128xf32>
    %73 = arith.addf %68, %72 : vector<16x128xf32>
    %c126_i32_30 = arith.constant 126 : i32
    %74 = tpu.dynamic_rotate %54 by %c126_i32_30 dim 1 : vector<16x128xf32>, i32 -> vector<16x128xf32>
    %c14 = arith.constant 14 : index
    %c0_31 = arith.constant 0 : index
    %75 = vector.load %arg3[%c14, %c0_31] : memref<25x128xf32, #tpu.memory_space<vmem>>, vector<1x128xf32>
    %76 = vector.broadcast %75 : vector<1x128xf32> to vector<16x128xf32>
    %77 = arith.mulf %76, %74 : vector<16x128xf32>
    %78 = arith.addf %73, %77 : vector<16x128xf32>
    %c0_32 = arith.constant 0 : index
    %c3_33 = arith.constant 3 : index
    %c0_34 = arith.constant 0 : index
    %79 = vector.load %arg1[%c0_32, %c3_33, %c0_34] : memref<1x20x128xf32, #tpu.memory_space<vmem>>, vector<1x16x128xf32>
    %80 = vector.shape_cast %79 : vector<1x16x128xf32> to vector<16x128xf32>
    %c2_i32_35 = arith.constant 2 : i32
    %81 = tpu.dynamic_rotate %80 by %c2_i32_35 dim 1 : vector<16x128xf32>, i32 -> vector<16x128xf32>
    %c15 = arith.constant 15 : index
    %c0_36 = arith.constant 0 : index
    %82 = vector.load %arg3[%c15, %c0_36] : memref<25x128xf32, #tpu.memory_space<vmem>>, vector<1x128xf32>
    %83 = vector.broadcast %82 : vector<1x128xf32> to vector<16x128xf32>
    %84 = arith.mulf %83, %81 : vector<16x128xf32>
    %85 = arith.addf %78, %84 : vector<16x128xf32>
    %c1_i32_37 = arith.constant 1 : i32
    %86 = tpu.dynamic_rotate %80 by %c1_i32_37 dim 1 : vector<16x128xf32>, i32 -> vector<16x128xf32>
    %c16 = arith.constant 16 : index
    %c0_38 = arith.constant 0 : index
    %87 = vector.load %arg3[%c16, %c0_38] : memref<25x128xf32, #tpu.memory_space<vmem>>, vector<1x128xf32>
    %88 = vector.broadcast %87 : vector<1x128xf32> to vector<16x128xf32>
    %89 = arith.mulf %88, %86 : vector<16x128xf32>
    %90 = arith.addf %85, %89 : vector<16x128xf32>
    %c17 = arith.constant 17 : index
    %c0_39 = arith.constant 0 : index
    %91 = vector.load %arg3[%c17, %c0_39] : memref<25x128xf32, #tpu.memory_space<vmem>>, vector<1x128xf32>
    %92 = vector.broadcast %91 : vector<1x128xf32> to vector<16x128xf32>
    %93 = arith.mulf %92, %80 : vector<16x128xf32>
    %94 = arith.addf %90, %93 : vector<16x128xf32>
    %c127_i32_40 = arith.constant 127 : i32
    %95 = tpu.dynamic_rotate %80 by %c127_i32_40 dim 1 : vector<16x128xf32>, i32 -> vector<16x128xf32>
    %c18 = arith.constant 18 : index
    %c0_41 = arith.constant 0 : index
    %96 = vector.load %arg3[%c18, %c0_41] : memref<25x128xf32, #tpu.memory_space<vmem>>, vector<1x128xf32>
    %97 = vector.broadcast %96 : vector<1x128xf32> to vector<16x128xf32>
    %98 = arith.mulf %97, %95 : vector<16x128xf32>
    %99 = arith.addf %94, %98 : vector<16x128xf32>
    %c126_i32_42 = arith.constant 126 : i32
    %100 = tpu.dynamic_rotate %80 by %c126_i32_42 dim 1 : vector<16x128xf32>, i32 -> vector<16x128xf32>
    %c19 = arith.constant 19 : index
    %c0_43 = arith.constant 0 : index
    %101 = vector.load %arg3[%c19, %c0_43] : memref<25x128xf32, #tpu.memory_space<vmem>>, vector<1x128xf32>
    %102 = vector.broadcast %101 : vector<1x128xf32> to vector<16x128xf32>
    %103 = arith.mulf %102, %100 : vector<16x128xf32>
    %104 = arith.addf %99, %103 : vector<16x128xf32>
    %c0_44 = arith.constant 0 : index
    %c4_45 = arith.constant 4 : index
    %c0_46 = arith.constant 0 : index
    %105 = vector.load %arg1[%c0_44, %c4_45, %c0_46] : memref<1x20x128xf32, #tpu.memory_space<vmem>>, vector<1x16x128xf32>
    %106 = vector.shape_cast %105 : vector<1x16x128xf32> to vector<16x128xf32>
    %c2_i32_47 = arith.constant 2 : i32
    %107 = tpu.dynamic_rotate %106 by %c2_i32_47 dim 1 : vector<16x128xf32>, i32 -> vector<16x128xf32>
    %c20 = arith.constant 20 : index
    %c0_48 = arith.constant 0 : index
    %108 = vector.load %arg3[%c20, %c0_48] : memref<25x128xf32, #tpu.memory_space<vmem>>, vector<1x128xf32>
    %109 = vector.broadcast %108 : vector<1x128xf32> to vector<16x128xf32>
    %110 = arith.mulf %109, %107 : vector<16x128xf32>
    %111 = arith.addf %104, %110 : vector<16x128xf32>
    %c1_i32_49 = arith.constant 1 : i32
    %112 = tpu.dynamic_rotate %106 by %c1_i32_49 dim 1 : vector<16x128xf32>, i32 -> vector<16x128xf32>
    %c21 = arith.constant 21 : index
    %c0_50 = arith.constant 0 : index
    %113 = vector.load %arg3[%c21, %c0_50] : memref<25x128xf32, #tpu.memory_space<vmem>>, vector<1x128xf32>
    %114 = vector.broadcast %113 : vector<1x128xf32> to vector<16x128xf32>
    %115 = arith.mulf %114, %112 : vector<16x128xf32>
    %116 = arith.addf %111, %115 : vector<16x128xf32>
    %c22 = arith.constant 22 : index
    %c0_51 = arith.constant 0 : index
    %117 = vector.load %arg3[%c22, %c0_51] : memref<25x128xf32, #tpu.memory_space<vmem>>, vector<1x128xf32>
    %118 = vector.broadcast %117 : vector<1x128xf32> to vector<16x128xf32>
    %119 = arith.mulf %118, %106 : vector<16x128xf32>
    %120 = arith.addf %116, %119 : vector<16x128xf32>
    %c127_i32_52 = arith.constant 127 : i32
    %121 = tpu.dynamic_rotate %106 by %c127_i32_52 dim 1 : vector<16x128xf32>, i32 -> vector<16x128xf32>
    %c23 = arith.constant 23 : index
    %c0_53 = arith.constant 0 : index
    %122 = vector.load %arg3[%c23, %c0_53] : memref<25x128xf32, #tpu.memory_space<vmem>>, vector<1x128xf32>
    %123 = vector.broadcast %122 : vector<1x128xf32> to vector<16x128xf32>
    %124 = arith.mulf %123, %121 : vector<16x128xf32>
    %125 = arith.addf %120, %124 : vector<16x128xf32>
    %c126_i32_54 = arith.constant 126 : i32
    %126 = tpu.dynamic_rotate %106 by %c126_i32_54 dim 1 : vector<16x128xf32>, i32 -> vector<16x128xf32>
    %c24 = arith.constant 24 : index
    %c0_55 = arith.constant 0 : index
    %127 = vector.load %arg3[%c24, %c0_55] : memref<25x128xf32, #tpu.memory_space<vmem>>, vector<1x128xf32>
    %128 = vector.broadcast %127 : vector<1x128xf32> to vector<16x128xf32>
    %129 = arith.mulf %128, %126 : vector<16x128xf32>
    %130 = arith.addf %125, %129 : vector<16x128xf32>
    %c0_56 = arith.constant 0 : index
    %c0_57 = arith.constant 0 : index
    %131 = vector.load %arg4[%c0_56, %c0_57] : memref<1x128xf32, #tpu.memory_space<vmem>>, vector<1x128xf32>
    %132 = vector.broadcast %131 : vector<1x128xf32> to vector<16x128xf32>
    %133 = arith.addf %130, %132 : vector<16x128xf32>
    %cst_58 = arith.constant 0.000000e+00 : f32
    %134 = vector.broadcast %cst_58 : f32 to vector<16x128xf32>
    %135 = arith.maximumf %133, %134 : vector<16x128xf32>
    %c127_i32_59 = arith.constant 127 : i32
    %136 = tpu.dynamic_rotate %135 by %c127_i32_59 dim 1 : vector<16x128xf32>, i32 -> vector<16x128xf32>
    %137 = arith.maximumf %135, %136 : vector<16x128xf32>
    %c15_i32 = arith.constant 15 : i32
    %138 = tpu.dynamic_rotate %137 by %c15_i32 dim 0 : vector<16x128xf32>, i32 -> vector<16x128xf32>
    %139 = arith.maximumf %137, %138 : vector<16x128xf32>
    %cst_60 = arith.constant 0.000000e+00 : f32
    %140 = vector.broadcast %cst_60 : f32 to vector<4x128xf32>
    %c0_61 = arith.constant 0 : index
    %c0_62 = arith.constant 0 : index
    %141 = vector.load %arg13[%c0_61, %c0_62] : memref<24x128xf32, #tpu.memory_space<vmem>>, vector<4x128xf32>
    tpu.vector_store %arg13[%c0_61, %c0_62], %140 {strides = array<i32>} : memref<24x128xf32, #tpu.memory_space<vmem>>, vector<4x128xf32>,
    %c4_63 = arith.constant 4 : index
    %c0_64 = arith.constant 0 : index
    %142 = vector.load %arg13[%c4_63, %c0_64] : memref<24x128xf32, #tpu.memory_space<vmem>>, vector<16x128xf32>
    tpu.vector_store %arg13[%c4_63, %c0_64], %139 {strides = array<i32>} : memref<24x128xf32, #tpu.memory_space<vmem>>, vector<16x128xf32>,
    %cst_65 = arith.constant 0.000000e+00 : f32
    %143 = vector.broadcast %cst_65 : f32 to vector<4x128xf32>
    %c20_66 = arith.constant 20 : index
    %c0_67 = arith.constant 0 : index
    %144 = vector.load %arg13[%c20_66, %c0_67] : memref<24x128xf32, #tpu.memory_space<vmem>>, vector<4x128xf32>
    tpu.vector_store %arg13[%c20_66, %c0_67], %143 {strides = array<i32>} : memref<24x128xf32, #tpu.memory_space<vmem>>, vector<4x128xf32>,
    %cst_68 = arith.constant 0.000000e+00 : f32
    %145 = vector.broadcast %cst_68 : f32 to vector<16x128xf32>
    %c0_69 = arith.constant 0 : index
    %c0_70 = arith.constant 0 : index
    %146 = vector.load %arg13[%c0_69, %c0_70] : memref<24x128xf32, #tpu.memory_space<vmem>>, vector<16x128xf32>
    %c4_i32 = arith.constant 4 : i32
    %147 = tpu.dynamic_rotate %146 by %c4_i32 dim 1 : vector<16x128xf32>, i32 -> vector<16x128xf32>
    %c0_71 = arith.constant 0 : index
    %c0_72 = arith.constant 0 : index
    %148 = vector.load %arg5[%c0_71, %c0_72] : memref<25x128xf32, #tpu.memory_space<vmem>>, vector<1x128xf32>
    %149 = vector.broadcast %148 : vector<1x128xf32> to vector<16x128xf32>
    %150 = arith.mulf %149, %147 : vector<16x128xf32>
    %151 = arith.addf %145, %150 : vector<16x128xf32>
    %c2_i32_73 = arith.constant 2 : i32
    %152 = tpu.dynamic_rotate %146 by %c2_i32_73 dim 1 : vector<16x128xf32>, i32 -> vector<16x128xf32>
    %c1_74 = arith.constant 1 : index
    %c0_75 = arith.constant 0 : index
    %153 = vector.load %arg5[%c1_74, %c0_75] : memref<25x128xf32, #tpu.memory_space<vmem>>, vector<1x128xf32>
    %154 = vector.broadcast %153 : vector<1x128xf32> to vector<16x128xf32>
    %155 = arith.mulf %154, %152 : vector<16x128xf32>
    %156 = arith.addf %151, %155 : vector<16x128xf32>
    %c2_76 = arith.constant 2 : index
    %c0_77 = arith.constant 0 : index
    %157 = vector.load %arg5[%c2_76, %c0_77] : memref<25x128xf32, #tpu.memory_space<vmem>>, vector<1x128xf32>
    %158 = vector.broadcast %157 : vector<1x128xf32> to vector<16x128xf32>
    %159 = arith.mulf %158, %146 : vector<16x128xf32>
    %160 = arith.addf %156, %159 : vector<16x128xf32>
    %c126_i32_78 = arith.constant 126 : i32
    %161 = tpu.dynamic_rotate %146 by %c126_i32_78 dim 1 : vector<16x128xf32>, i32 -> vector<16x128xf32>
    %c3_79 = arith.constant 3 : index
    %c0_80 = arith.constant 0 : index
    %162 = vector.load %arg5[%c3_79, %c0_80] : memref<25x128xf32, #tpu.memory_space<vmem>>, vector<1x128xf32>
    %163 = vector.broadcast %162 : vector<1x128xf32> to vector<16x128xf32>
    %164 = arith.mulf %163, %161 : vector<16x128xf32>
    %165 = arith.addf %160, %164 : vector<16x128xf32>
    %c124_i32 = arith.constant 124 : i32
    %166 = tpu.dynamic_rotate %146 by %c124_i32 dim 1 : vector<16x128xf32>, i32 -> vector<16x128xf32>
    %c4_81 = arith.constant 4 : index
    %c0_82 = arith.constant 0 : index
    %167 = vector.load %arg5[%c4_81, %c0_82] : memref<25x128xf32, #tpu.memory_space<vmem>>, vector<1x128xf32>
    %168 = vector.broadcast %167 : vector<1x128xf32> to vector<16x128xf32>
    %169 = arith.mulf %168, %166 : vector<16x128xf32>
    %170 = arith.addf %165, %169 : vector<16x128xf32>
    %c2_83 = arith.constant 2 : index
    %c0_84 = arith.constant 0 : index
    %171 = vector.load %arg13[%c2_83, %c0_84] : memref<24x128xf32, #tpu.memory_space<vmem>>, vector<16x128xf32>
    %c4_i32_85 = arith.constant 4 : i32
    %172 = tpu.dynamic_rotate %171 by %c4_i32_85 dim 1 : vector<16x128xf32>, i32 -> vector<16x128xf32>
    %c5_86 = arith.constant 5 : index
    %c0_87 = arith.constant 0 : index
    %173 = vector.load %arg5[%c5_86, %c0_87] : memref<25x128xf32, #tpu.memory_space<vmem>>, vector<1x128xf32>
    %174 = vector.broadcast %173 : vector<1x128xf32> to vector<16x128xf32>
    %175 = arith.mulf %174, %172 : vector<16x128xf32>
    %176 = arith.addf %170, %175 : vector<16x128xf32>
    %c2_i32_88 = arith.constant 2 : i32
    %177 = tpu.dynamic_rotate %171 by %c2_i32_88 dim 1 : vector<16x128xf32>, i32 -> vector<16x128xf32>
    %c6_89 = arith.constant 6 : index
    %c0_90 = arith.constant 0 : index
    %178 = vector.load %arg5[%c6_89, %c0_90] : memref<25x128xf32, #tpu.memory_space<vmem>>, vector<1x128xf32>
    %179 = vector.broadcast %178 : vector<1x128xf32> to vector<16x128xf32>
    %180 = arith.mulf %179, %177 : vector<16x128xf32>
    %181 = arith.addf %176, %180 : vector<16x128xf32>
    %c7_91 = arith.constant 7 : index
    %c0_92 = arith.constant 0 : index
    %182 = vector.load %arg5[%c7_91, %c0_92] : memref<25x128xf32, #tpu.memory_space<vmem>>, vector<1x128xf32>
    %183 = vector.broadcast %182 : vector<1x128xf32> to vector<16x128xf32>
    %184 = arith.mulf %183, %171 : vector<16x128xf32>
    %185 = arith.addf %181, %184 : vector<16x128xf32>
    %c126_i32_93 = arith.constant 126 : i32
    %186 = tpu.dynamic_rotate %171 by %c126_i32_93 dim 1 : vector<16x128xf32>, i32 -> vector<16x128xf32>
    %c8_94 = arith.constant 8 : index
    %c0_95 = arith.constant 0 : index
    %187 = vector.load %arg5[%c8_94, %c0_95] : memref<25x128xf32, #tpu.memory_space<vmem>>, vector<1x128xf32>
    %188 = vector.broadcast %187 : vector<1x128xf32> to vector<16x128xf32>
    %189 = arith.mulf %188, %186 : vector<16x128xf32>
    %190 = arith.addf %185, %189 : vector<16x128xf32>
    %c124_i32_96 = arith.constant 124 : i32
    %191 = tpu.dynamic_rotate %171 by %c124_i32_96 dim 1 : vector<16x128xf32>, i32 -> vector<16x128xf32>
    %c9_97 = arith.constant 9 : index
    %c0_98 = arith.constant 0 : index
    %192 = vector.load %arg5[%c9_97, %c0_98] : memref<25x128xf32, #tpu.memory_space<vmem>>, vector<1x128xf32>
    %193 = vector.broadcast %192 : vector<1x128xf32> to vector<16x128xf32>
    %194 = arith.mulf %193, %191 : vector<16x128xf32>
    %195 = arith.addf %190, %194 : vector<16x128xf32>
    %c4_99 = arith.constant 4 : index
    %c0_100 = arith.constant 0 : index
    %196 = vector.load %arg13[%c4_99, %c0_100] : memref<24x128xf32, #tpu.memory_space<vmem>>, vector<16x128xf32>
    %c4_i32_101 = arith.constant 4 : i32
    %197 = tpu.dynamic_rotate %196 by %c4_i32_101 dim 1 : vector<16x128xf32>, i32 -> vector<16x128xf32>
    %c10_102 = arith.constant 10 : index
    %c0_103 = arith.constant 0 : index
    %198 = vector.load %arg5[%c10_102, %c0_103] : memref<25x128xf32, #tpu.memory_space<vmem>>, vector<1x128xf32>
    %199 = vector.broadcast %198 : vector<1x128xf32> to vector<16x128xf32>
    %200 = arith.mulf %199, %197 : vector<16x128xf32>
    %201 = arith.addf %195, %200 : vector<16x128xf32>
    %c2_i32_104 = arith.constant 2 : i32
    %202 = tpu.dynamic_rotate %196 by %c2_i32_104 dim 1 : vector<16x128xf32>, i32 -> vector<16x128xf32>
    %c11_105 = arith.constant 11 : index
    %c0_106 = arith.constant 0 : index
    %203 = vector.load %arg5[%c11_105, %c0_106] : memref<25x128xf32, #tpu.memory_space<vmem>>, vector<1x128xf32>
    %204 = vector.broadcast %203 : vector<1x128xf32> to vector<16x128xf32>
    %205 = arith.mulf %204, %202 : vector<16x128xf32>
    %206 = arith.addf %201, %205 : vector<16x128xf32>
    %c12_107 = arith.constant 12 : index
    %c0_108 = arith.constant 0 : index
    %207 = vector.load %arg5[%c12_107, %c0_108] : memref<25x128xf32, #tpu.memory_space<vmem>>, vector<1x128xf32>
    %208 = vector.broadcast %207 : vector<1x128xf32> to vector<16x128xf32>
    %209 = arith.mulf %208, %196 : vector<16x128xf32>
    %210 = arith.addf %206, %209 : vector<16x128xf32>
    %c126_i32_109 = arith.constant 126 : i32
    %211 = tpu.dynamic_rotate %196 by %c126_i32_109 dim 1 : vector<16x128xf32>, i32 -> vector<16x128xf32>
    %c13_110 = arith.constant 13 : index
    %c0_111 = arith.constant 0 : index
    %212 = vector.load %arg5[%c13_110, %c0_111] : memref<25x128xf32, #tpu.memory_space<vmem>>, vector<1x128xf32>
    %213 = vector.broadcast %212 : vector<1x128xf32> to vector<16x128xf32>
    %214 = arith.mulf %213, %211 : vector<16x128xf32>
    %215 = arith.addf %210, %214 : vector<16x128xf32>
    %c124_i32_112 = arith.constant 124 : i32
    %216 = tpu.dynamic_rotate %196 by %c124_i32_112 dim 1 : vector<16x128xf32>, i32 -> vector<16x128xf32>
    %c14_113 = arith.constant 14 : index
    %c0_114 = arith.constant 0 : index
    %217 = vector.load %arg5[%c14_113, %c0_114] : memref<25x128xf32, #tpu.memory_space<vmem>>, vector<1x128xf32>
    %218 = vector.broadcast %217 : vector<1x128xf32> to vector<16x128xf32>
    %219 = arith.mulf %218, %216 : vector<16x128xf32>
    %220 = arith.addf %215, %219 : vector<16x128xf32>
    %c6_115 = arith.constant 6 : index
    %c0_116 = arith.constant 0 : index
    %221 = vector.load %arg13[%c6_115, %c0_116] : memref<24x128xf32, #tpu.memory_space<vmem>>, vector<16x128xf32>
    %c4_i32_117 = arith.constant 4 : i32
    %222 = tpu.dynamic_rotate %221 by %c4_i32_117 dim 1 : vector<16x128xf32>, i32 -> vector<16x128xf32>
    %c15_118 = arith.constant 15 : index
    %c0_119 = arith.constant 0 : index
    %223 = vector.load %arg5[%c15_118, %c0_119] : memref<25x128xf32, #tpu.memory_space<vmem>>, vector<1x128xf32>
    %224 = vector.broadcast %223 : vector<1x128xf32> to vector<16x128xf32>
    %225 = arith.mulf %224, %222 : vector<16x128xf32>
    %226 = arith.addf %220, %225 : vector<16x128xf32>
    %c2_i32_120 = arith.constant 2 : i32
    %227 = tpu.dynamic_rotate %221 by %c2_i32_120 dim 1 : vector<16x128xf32>, i32 -> vector<16x128xf32>
    %c16_121 = arith.constant 16 : index
    %c0_122 = arith.constant 0 : index
    %228 = vector.load %arg5[%c16_121, %c0_122] : memref<25x128xf32, #tpu.memory_space<vmem>>, vector<1x128xf32>
    %229 = vector.broadcast %228 : vector<1x128xf32> to vector<16x128xf32>
    %230 = arith.mulf %229, %227 : vector<16x128xf32>
    %231 = arith.addf %226, %230 : vector<16x128xf32>
    %c17_123 = arith.constant 17 : index
    %c0_124 = arith.constant 0 : index
    %232 = vector.load %arg5[%c17_123, %c0_124] : memref<25x128xf32, #tpu.memory_space<vmem>>, vector<1x128xf32>
    %233 = vector.broadcast %232 : vector<1x128xf32> to vector<16x128xf32>
    %234 = arith.mulf %233, %221 : vector<16x128xf32>
    %235 = arith.addf %231, %234 : vector<16x128xf32>
    %c126_i32_125 = arith.constant 126 : i32
    %236 = tpu.dynamic_rotate %221 by %c126_i32_125 dim 1 : vector<16x128xf32>, i32 -> vector<16x128xf32>
    %c18_126 = arith.constant 18 : index
    %c0_127 = arith.constant 0 : index
    %237 = vector.load %arg5[%c18_126, %c0_127] : memref<25x128xf32, #tpu.memory_space<vmem>>, vector<1x128xf32>
    %238 = vector.broadcast %237 : vector<1x128xf32> to vector<16x128xf32>
    %239 = arith.mulf %238, %236 : vector<16x128xf32>
    %240 = arith.addf %235, %239 : vector<16x128xf32>
    %c124_i32_128 = arith.constant 124 : i32
    %241 = tpu.dynamic_rotate %221 by %c124_i32_128 dim 1 : vector<16x128xf32>, i32 -> vector<16x128xf32>
    %c19_129 = arith.constant 19 : index
    %c0_130 = arith.constant 0 : index
    %242 = vector.load %arg5[%c19_129, %c0_130] : memref<25x128xf32, #tpu.memory_space<vmem>>, vector<1x128xf32>
    %243 = vector.broadcast %242 : vector<1x128xf32> to vector<16x128xf32>
    %244 = arith.mulf %243, %241 : vector<16x128xf32>
    %245 = arith.addf %240, %244 : vector<16x128xf32>
    %c8_131 = arith.constant 8 : index
    %c0_132 = arith.constant 0 : index
    %246 = vector.load %arg13[%c8_131, %c0_132] : memref<24x128xf32, #tpu.memory_space<vmem>>, vector<16x128xf32>
    %c4_i32_133 = arith.constant 4 : i32
    %247 = tpu.dynamic_rotate %246 by %c4_i32_133 dim 1 : vector<16x128xf32>, i32 -> vector<16x128xf32>
    %c20_134 = arith.constant 20 : index
    %c0_135 = arith.constant 0 : index
    %248 = vector.load %arg5[%c20_134, %c0_135] : memref<25x128xf32, #tpu.memory_space<vmem>>, vector<1x128xf32>
    %249 = vector.broadcast %248 : vector<1x128xf32> to vector<16x128xf32>
    %250 = arith.mulf %249, %247 : vector<16x128xf32>
    %251 = arith.addf %245, %250 : vector<16x128xf32>
    %c2_i32_136 = arith.constant 2 : i32
    %252 = tpu.dynamic_rotate %246 by %c2_i32_136 dim 1 : vector<16x128xf32>, i32 -> vector<16x128xf32>
    %c21_137 = arith.constant 21 : index
    %c0_138 = arith.constant 0 : index
    %253 = vector.load %arg5[%c21_137, %c0_138] : memref<25x128xf32, #tpu.memory_space<vmem>>, vector<1x128xf32>
    %254 = vector.broadcast %253 : vector<1x128xf32> to vector<16x128xf32>
    %255 = arith.mulf %254, %252 : vector<16x128xf32>
    %256 = arith.addf %251, %255 : vector<16x128xf32>
    %c22_139 = arith.constant 22 : index
    %c0_140 = arith.constant 0 : index
    %257 = vector.load %arg5[%c22_139, %c0_140] : memref<25x128xf32, #tpu.memory_space<vmem>>, vector<1x128xf32>
    %258 = vector.broadcast %257 : vector<1x128xf32> to vector<16x128xf32>
    %259 = arith.mulf %258, %246 : vector<16x128xf32>
    %260 = arith.addf %256, %259 : vector<16x128xf32>
    %c126_i32_141 = arith.constant 126 : i32
    %261 = tpu.dynamic_rotate %246 by %c126_i32_141 dim 1 : vector<16x128xf32>, i32 -> vector<16x128xf32>
    %c23_142 = arith.constant 23 : index
    %c0_143 = arith.constant 0 : index
    %262 = vector.load %arg5[%c23_142, %c0_143] : memref<25x128xf32, #tpu.memory_space<vmem>>, vector<1x128xf32>
    %263 = vector.broadcast %262 : vector<1x128xf32> to vector<16x128xf32>
    %264 = arith.mulf %263, %261 : vector<16x128xf32>
    %265 = arith.addf %260, %264 : vector<16x128xf32>
    %c124_i32_144 = arith.constant 124 : i32
    %266 = tpu.dynamic_rotate %246 by %c124_i32_144 dim 1 : vector<16x128xf32>, i32 -> vector<16x128xf32>
    %c24_145 = arith.constant 24 : index
    %c0_146 = arith.constant 0 : index
    %267 = vector.load %arg5[%c24_145, %c0_146] : memref<25x128xf32, #tpu.memory_space<vmem>>, vector<1x128xf32>
    %268 = vector.broadcast %267 : vector<1x128xf32> to vector<16x128xf32>
    %269 = arith.mulf %268, %266 : vector<16x128xf32>
    %270 = arith.addf %265, %269 : vector<16x128xf32>
    %c0_147 = arith.constant 0 : index
    %c0_148 = arith.constant 0 : index
    %271 = vector.load %arg6[%c0_147, %c0_148] : memref<1x128xf32, #tpu.memory_space<vmem>>, vector<1x128xf32>
    %272 = vector.broadcast %271 : vector<1x128xf32> to vector<16x128xf32>
    %273 = arith.addf %270, %272 : vector<16x128xf32>
    %cst_149 = arith.constant 0.000000e+00 : f32
    %274 = vector.broadcast %cst_149 : f32 to vector<16x128xf32>
    %275 = arith.maximumf %273, %274 : vector<16x128xf32>
    %c126_i32_150 = arith.constant 126 : i32
    %276 = tpu.dynamic_rotate %275 by %c126_i32_150 dim 1 : vector<16x128xf32>, i32 -> vector<16x128xf32>
    %277 = arith.maximumf %275, %276 : vector<16x128xf32>
    %c14_i32 = arith.constant 14 : i32
    %278 = tpu.dynamic_rotate %277 by %c14_i32 dim 0 : vector<16x128xf32>, i32 -> vector<16x128xf32>
    %279 = arith.maximumf %277, %278 : vector<16x128xf32>
    %c0_151 = arith.constant 0 : index
    %c0_152 = arith.constant 0 : index
    %c0_153 = arith.constant 0 : index
    %280 = vector.load %arg2[%c0_151, %c0_152, %c0_153] : memref<1x16x256xf32, #tpu.memory_space<vmem>>, vector<1x16x256xf32>
    %281 = vector.shape_cast %280 : vector<1x16x256xf32> to vector<16x256xf32>
    %c0_154 = arith.constant 0 : index
    %c0_155 = arith.constant 0 : index
    %282 = vector.load %arg9[%c0_154, %c0_155] : memref<256x128xf32, #tpu.memory_space<vmem>>, vector<256x128xf32>
    %cst_156 = arith.constant dense<0.000000e+00> : vector<16x128xf32>
    %283 = tpu.matmul %281, %282, %cst_156 {dimension_numbers = #tpu.dot_dimension_numbers<[1], [0], [0], [1], [0, 0, 1, 1], [], []>, precision = #tpu.contract_precision<fp32>} : vector<16x256xf32>, vector<256x128xf32>, vector<16x128xf32> -> vector<16x128xf32>
    %c0_157 = arith.constant 0 : index
    %c0_158 = arith.constant 0 : index
    %284 = vector.load %arg10[%c0_157, %c0_158] : memref<16x128xf32, #tpu.memory_space<vmem>>, vector<16x128xf32>
    %285 = arith.addf %283, %284 : vector<16x128xf32>
    %c0_159 = arith.constant 0 : index
    %c0_160 = arith.constant 0 : index
    %286 = vector.load %arg7[%c0_159, %c0_160] : memref<1x128xf32, #tpu.memory_space<vmem>>, vector<1x128xf32>
    %287 = vector.broadcast %286 : vector<1x128xf32> to vector<16x128xf32>
    %288 = arith.mulf %279, %287 : vector<16x128xf32>
    %c0_161 = arith.constant 0 : index
    %c0_162 = arith.constant 0 : index
    %289 = vector.load %arg8[%c0_161, %c0_162] : memref<1x128xf32, #tpu.memory_space<vmem>>, vector<1x128xf32>
    %290 = vector.broadcast %289 : vector<1x128xf32> to vector<16x128xf32>
    %291 = arith.addf %288, %290 : vector<16x128xf32>
    %292 = arith.mulf %285, %291 : vector<16x128xf32>
    %cst_163 = arith.constant dense<0.000000e+00> : vector<128xf32>
    %293 = vector.multi_reduction <add>, %292, %cst_163 [0] : vector<16x128xf32> to vector<128xf32>
    %294 = vector.shape_cast %293 : vector<128xf32> to vector<1x128xf32>
    %c0_164 = arith.constant 0 : index
    %c0_165 = arith.constant 0 : index
    %295 = vector.load %arg11[%c0_164, %c0_165] : memref<128x128xf32, #tpu.memory_space<vmem>>, vector<128x128xf32>
    %cst_166 = arith.constant dense<0.000000e+00> : vector<1x128xf32>
    %296 = tpu.matmul %294, %295, %cst_166 {dimension_numbers = #tpu.dot_dimension_numbers<[1], [0], [0], [1], [0, 0, 1, 1], [], []>, precision = #tpu.contract_precision<fp32>} : vector<1x128xf32>, vector<128x128xf32>, vector<1x128xf32> -> vector<1x128xf32>
    %cst_167 = arith.constant dense<0xFF800000> : vector<1xf32>
    %297 = vector.multi_reduction <maximumf>, %296, %cst_167 [1] : vector<1x128xf32> to vector<1xf32>
    %298 = vector.shape_cast %297 : vector<1xf32> to vector<1x1xf32>
    %299 = vector.broadcast %298 : vector<1x1xf32> to vector<1x128xf32>
    %300 = arith.subf %296, %299 : vector<1x128xf32>
    %301 = math.exp %300 : vector<1x128xf32>
    %cst_168 = arith.constant dense<0.000000e+00> : vector<1xf32>
    %302 = vector.multi_reduction <add>, %301, %cst_168 [1] : vector<1x128xf32> to vector<1xf32>
    %303 = vector.shape_cast %302 : vector<1xf32> to vector<1x1xf32>
    %cst_169 = arith.constant 3.200000e+01 : f32
    %304 = vector.broadcast %cst_169 : f32 to vector<1x1xf32>
    %305 = arith.divf %304, %303 : vector<1x1xf32>
    %306 = vector.broadcast %305 : vector<1x1xf32> to vector<1x128xf32>
    %307 = arith.mulf %301, %306 : vector<1x128xf32>
    %c0_170 = arith.constant 0 : index
    %c0_171 = arith.constant 0 : index
    %c0_172 = arith.constant 0 : index
    %308 = vector.load %arg1[%c0_170, %c0_171, %c0_172] : memref<1x20x128xf32, #tpu.memory_space<vmem>>, vector<1x20x128xf32>
    %309 = vector.shape_cast %308 : vector<1x20x128xf32> to vector<20x128xf32>
    %310 = vector.broadcast %307 : vector<1x128xf32> to vector<20x128xf32>
    %311 = arith.mulf %309, %310 : vector<20x128xf32>
    %c0_173 = arith.constant 0 : index
    %c0_174 = arith.constant 0 : index
    %c0_175 = arith.constant 0 : index
    %312 = vector.load %arg12[%c0_173, %c0_174, %c0_175] : memref<1x20x128xf32, #tpu.memory_space<vmem>>, vector<1x20x128xf32>
    %313 = vector.shape_cast %312 : vector<1x20x128xf32> to vector<20x128xf32>
    %314 = vector.shape_cast %311 : vector<20x128xf32> to vector<1x20x128xf32>
    tpu.vector_store %arg12[%c0_173, %c0_174, %c0_175], %314 {strides = array<i32>} : memref<1x20x128xf32, #tpu.memory_space<vmem>>, vector<1x20x128xf32>,
    return
  }
  func.func @transform_0(%arg0: i32) -> (i32, i32, i32) {
    %c0_i32 = arith.constant 0 : i32
    %c0_i32_0 = arith.constant 0 : i32
    %c0_i32_1 = arith.constant 0 : i32
    return %arg0, %c0_i32, %c0_i32_0 : i32, i32, i32
  }
  func.func @transform_1(%arg0: i32) -> (i32, i32, i32) {
    %c0_i32 = arith.constant 0 : i32
    %c0_i32_0 = arith.constant 0 : i32
    %c0_i32_1 = arith.constant 0 : i32
    return %arg0, %c0_i32, %c0_i32_0 : i32, i32, i32
  }
  func.func @transform_2(%arg0: i32) -> (i32, i32) {
    %c0_i32 = arith.constant 0 : i32
    %c0_i32_0 = arith.constant 0 : i32
    %c0_i32_1 = arith.constant 0 : i32
    return %c0_i32, %c0_i32_0 : i32, i32
  }
  func.func @transform_3(%arg0: i32) -> (i32, i32) {
    %c0_i32 = arith.constant 0 : i32
    %c0_i32_0 = arith.constant 0 : i32
    %c0_i32_1 = arith.constant 0 : i32
    return %c0_i32, %c0_i32_0 : i32, i32
  }
  func.func @transform_4(%arg0: i32) -> (i32, i32) {
    %c0_i32 = arith.constant 0 : i32
    %c0_i32_0 = arith.constant 0 : i32
    %c0_i32_1 = arith.constant 0 : i32
    return %c0_i32, %c0_i32_0 : i32, i32
  }
  func.func @transform_5(%arg0: i32) -> (i32, i32) {
    %c0_i32 = arith.constant 0 : i32
    %c0_i32_0 = arith.constant 0 : i32
    %c0_i32_1 = arith.constant 0 : i32
    return %c0_i32, %c0_i32_0 : i32, i32
  }
  func.func @transform_6(%arg0: i32) -> (i32, i32) {
    %c0_i32 = arith.constant 0 : i32
    %c0_i32_0 = arith.constant 0 : i32
    %c0_i32_1 = arith.constant 0 : i32
    return %c0_i32, %c0_i32_0 : i32, i32
  }
  func.func @transform_7(%arg0: i32) -> (i32, i32) {
    %c0_i32 = arith.constant 0 : i32
    %c0_i32_0 = arith.constant 0 : i32
    %c0_i32_1 = arith.constant 0 : i32
    return %c0_i32, %c0_i32_0 : i32, i32
  }
  func.func @transform_8(%arg0: i32) -> (i32, i32) {
    %c0_i32 = arith.constant 0 : i32
    %c0_i32_0 = arith.constant 0 : i32
    %c0_i32_1 = arith.constant 0 : i32
    return %c0_i32, %c0_i32_0 : i32, i32
  }
  func.func @transform_9(%arg0: i32) -> (i32, i32) {
    %c0_i32 = arith.constant 0 : i32
    %c0_i32_0 = arith.constant 0 : i32
    %c0_i32_1 = arith.constant 0 : i32
    return %c0_i32, %c0_i32_0 : i32, i32
  }
  func.func @transform_10(%arg0: i32) -> (i32, i32) {
    %c0_i32 = arith.constant 0 : i32
    %c0_i32_0 = arith.constant 0 : i32
    %c0_i32_1 = arith.constant 0 : i32
    return %c0_i32, %c0_i32_0 : i32, i32
  }
  func.func @transform_11(%arg0: i32) -> (i32, i32, i32) {
    %c0_i32 = arith.constant 0 : i32
    %c0_i32_0 = arith.constant 0 : i32
    %c0_i32_1 = arith.constant 0 : i32
    return %arg0, %c0_i32, %c0_i32_0 : i32, i32, i32
  }
}

</mosaic_0001>

<bundles_post_ra>
// kernel: tpu_custom_call.1
= control target key start
LH: loop header
LB: loop body
LE: loop exit
PB: predicated region body
PF: predicated region fallthrough
CT: control target
= control target key end

     0   :  { %16 = vsyncpa [#allocation4], 0  ;;  %s5593_s0 = inlined_call_operand.vmem [shape: f32[2,20,128], index: 0, kind: input, shape index: {}]   ;;  %s5594_s1 = inlined_call_operand.vmem [shape: f32[2,16,256], index: 1, kind: input, shape index: {}]   ;;  %s5595_s2 = inlined_call_operand.hbm [shape: f32[25,128], index: 2, kind: input, shape index: {}]   ;;  %s5596_s3 = inlined_call_operand.vmem [shape: f32[1,128], index: 3, kind: input, shape index: {}]   ;;  %s5597_s4 = inlined_call_operand.vmem [shape: f32[25,128], index: 4, kind: input, shape index: {}]   ;;  %s5598_s5 = inlined_call_operand.vmem [shape: f32[1,128], index: 5, kind: input, shape index: {}]   ;;  %s5599_s6 = inlined_call_operand.hbm [shape: f32[1,128], index: 6, kind: input, shape index: {}]   ;;  %s5600_s7 = inlined_call_operand.hbm [shape: f32[1,128], index: 7, kind: input, shape index: {}]   ;;  %s5601_s8 = inlined_call_operand.hbm [shape: f32[256,128], index: 8, kind: input, shape index: {}]   ;;  %s5602_s9 = inlined_call_operand.vmem [shape: f32[16,128], index: 9, kind: input, shape index: {}]   ;;  %s5603_s10 = inlined_call_operand.hbm [shape: f32[128,128], index: 10, kind: input, shape index: {}]   ;;  %s5604_s11 = inlined_call_operand.vmem [shape: f32[2,20,128], index: 11, kind: output, shape index: {}]  }
   0x1   :  { %17 = vsyncpa [#allocation6], 0 }
   0x2   :  { %18 = vsyncpa [#allocation9], 0  ;;  %s4215_s17 = smov 0  }
   0x3 LB: > { %s4139_s18 = smov [#allocation5]   ;;  %s4221_s20 = sadd.s32 4294967295, %s4137_s17   ;;  %s4137_s17 = sphi %s4215_s17, %s24_s17  }
   0x4   : > { %s331_s19 = sshll.u32 %s4139_s18, 4  ;;  %p2945_p0 = scmp.ge.s32.totalorder %s4137_s17, 1  ;;  %s4226_s19 = int_to_ptr.vmem [resolvable:$true] %s331_s19 }
   0x5   : > { %p296_p1 = scmp.lt.s32.totalorder %s4137_s17, 3  ;;  %p5605_p2 = scmp.eq.s32.totalorder %s4221_s20, 0 }
   0x6   : > { %s4140_s22 = smov [#allocation8]   ;;  %s4141_s25 = smov [#allocation3]  }
   0x7   : > { %p4228_p3 = pnand %p2945_p0, %p296_p1  ;;  %s352_s23 = sshll.u32 %s4140_s22, 4  ;;  %s4234_s23 = int_to_ptr.vmem [resolvable:$true] %s352_s23 }
   0x8   : > { %s308_s26 = sshll.u32 %s4141_s25, 4  ;;  %s4142_s27 = smov [#allocation7]   ;;  %s4242_s26 = int_to_ptr.vmem [resolvable:$true] %s308_s26 }
   0x9   : > { %s5676_s21 = scalar_select %p4228_p3, 1, 0 }
   0xa   : > { %p3925_p4 = pneg %p4228_p3  ;;  %s4244_s28 = sshll.u32 %s4142_s27, 4  ;;  %s343_s28 = int_to_ptr.vmem [resolvable:$true] %s4244_s28 }
   0xb   : > { %s3979_s12 = scalar_lea.hbm %s5599_s6, 16 }
   0xc   : > { %p4238_p5 = pnand %p5605_p2, %p3925_p4  ;;  %p3980_p6 = scmp.ne.s32.totalorder %s5599_s6, %s3979_s12 }
   0xd   : > { %p3986_p10 = scmp.lt.u32.totalorder %s3979_s12, %s5599_s6 }
   0xe   : > { %p4254_p7 = pneg %p4238_p5 }
  0x10   : > { %p3982_p8 = pnand %p4254_p7, %p3980_p6 }
  0x12   : > { %p3983_p9 = pneg %p3982_p8 }
  0x14   : > { %p3988_p11 = pnand %p3986_p10, %p3983_p9 }
  0x16   : > { %3991 = shalt.err (!%p3988_p11)
}
  0x17   : > { %s3992_s22 = scalar_lea.vmem %s4226_s19, 16  ;;  %s3999_s25 = scalar_lea.vmem %s4226_s19, 32 }
  0x18   : > { %p3993_p12 = scmp.ne.s32.totalorder %s4226_s19, %s3992_s22  ;;  %p4000_p1 = scmp.lt.s32.totalorder %s4226_s19, %s4226_s19 }
  0x19   : > { %p4001_p4 = scmp.lt.s32.totalorder %s3999_s25, %s3992_s22 }
  0x1a   : > { %p3995_p13 = pnand %p3993_p12, %p4254_p7 }
  0x1b   : > { %p4002_p6 = por %p4001_p4, %p4000_p1 }
  0x1c   : > { %p3996_p0 = pneg %p3995_p13 }
  0x1e   : > { %p4003_p8 = pnand %p4002_p6, %p3996_p0 }
  0x20   : > { %4006 = shalt.err (!%p4003_p8)
}
  0x21   : > { %3931 = dma.hbm_to_vmem [thread:$0]  (!%p4238_p5), %s5599_s6, 16, %s4226_s19, [#allocation6]  }
  0x22   : > { %s4007_s13 = scalar_lea.hbm %s5601_s8, 4096 }
  0x23   : > { %p4008_p9 = scmp.ne.s32.totalorder %s5601_s8, %s4007_s13  ;;  %p4014_p12 = scmp.lt.u32.totalorder %s4007_s13, %s5601_s8 }
  0x25   : > { %p4010_p10 = pnand %p4008_p9, %p4254_p7 }
  0x27   : > { %p4011_p11 = pneg %p4010_p10 }
  0x29   : > { %p4016_p13 = pnand %p4014_p12, %p4011_p11 }
  0x2b   : > { %4019 = shalt.err (!%p4016_p13)
}
  0x2c   : > { %s4020_s19 = scalar_lea.vmem %s4234_s23, 4096  ;;  %p4028_p6 = scmp.lt.s32.totalorder %s4234_s23, %s4234_s23 }
  0x2d   : > { %p4021_p0 = scmp.ne.s32.totalorder %s4234_s23, %s4020_s19  ;;  %p4029_p8 = scmp.lt.s32.totalorder %s4020_s19, %s4020_s19 }
  0x2f   : > { %p4023_p1 = pnand %p4021_p0, %p4254_p7  ;;  %p4030_p9 = por %p4029_p8, %p4028_p6 }
  0x31   : > { %p4024_p4 = pneg %p4023_p1 }
  0x33   : > { %p4031_p10 = pnand %p4030_p9, %p4024_p4 }
  0x35   : > { %4034 = shalt.err (!%p4031_p10)
}
  0x36   : > { %s4143_s25 = smov 128   ;;  %s4144_s27 = smov 8  }
  0x37   : > { %3937 = dma.hbm_to_vmem [thread:$0]  (!%p4238_p5), %s5601_s8, 4096, %s4234_s23, [#allocation9], %s4143_s25, %s4143_s25, %s4144_s27  }
  0x38   : > { %s4035_s14 = scalar_lea.hbm %s5595_s2, 512 }
  0x39   : > { %p4036_p11 = scmp.ne.s32.totalorder %s5595_s2, %s4035_s14  ;;  %p4042_p0 = scmp.lt.u32.totalorder %s4035_s14, %s5595_s2 }
  0x3b   : > { %p4038_p12 = pnand %p4036_p11, %p4254_p7 }
  0x3d   : > { %p4039_p13 = pneg %p4038_p12 }
  0x3f   : > { %p4044_p1 = pnand %p4042_p0, %p4039_p13 }
  0x41   : > { %4047 = shalt.err (!%p4044_p1)
}
  0x42   : > { %s4048_s23 = scalar_lea.vmem %s4242_s26, 512  ;;  %p4056_p9 = scmp.lt.s32.totalorder %s4242_s26, %s4242_s26 }
  0x43   : > { %p4049_p4 = scmp.ne.s32.totalorder %s4242_s26, %s4048_s23  ;;  %p4057_p10 = scmp.lt.s32.totalorder %s4048_s23, %s4048_s23 }
  0x45   : > { %p4051_p6 = pnand %p4049_p4, %p4254_p7  ;;  %p4058_p11 = por %p4057_p10, %p4056_p9 }
  0x47   : > { %p4052_p8 = pneg %p4051_p6 }
  0x49   : > { %p4059_p12 = pnand %p4058_p11, %p4052_p8 }
  0x4b   : > { %4062 = shalt.err (!%p4059_p12)
}
  0x4c   : > { %3928 = dma.hbm_to_vmem [thread:$0]  (!%p4238_p5), %s5595_s2, 512, %s4242_s26, [#allocation4], %s4143_s25, %s4143_s25, %s4144_s27  }
  0x4d   : > { %s4063_s14 = scalar_lea.hbm %s5600_s7, 16 }
  0x4e   : > { %p4064_p13 = scmp.ne.s32.totalorder %s5600_s7, %s4063_s14  ;;  %p4070_p4 = scmp.lt.u32.totalorder %s4063_s14, %s5600_s7 }
  0x50   : > { %p4066_p0 = pnand %p4064_p13, %p4254_p7 }
  0x52   : > { %p4067_p1 = pneg %p4066_p0 }
  0x54   : > { %p4072_p6 = pnand %p4070_p4, %p4067_p1 }
  0x56   : > { %4075 = shalt.err (!%p4072_p6)
}
  0x57   : > { %s4076_s23 = scalar_lea.vmem %s343_s28, 16  ;;  %s4083_s26 = scalar_lea.vmem %s343_s28, 32 }
  0x58   : > { %p4077_p8 = scmp.ne.s32.totalorder %s343_s28, %s4076_s23  ;;  %p4084_p11 = scmp.lt.s32.totalorder %s343_s28, %s343_s28 }
  0x59   : > { %p4085_p12 = scmp.lt.s32.totalorder %s4083_s26, %s4076_s23 }
  0x5a   : > { %p4079_p9 = pnand %p4077_p8, %p4254_p7 }
  0x5b   : > { %p4086_p2 = por %p4085_p12, %p4084_p11 }
  0x5c   : > { %p4080_p10 = pneg %p4079_p9 }
  0x5e   : > { %p4087_p3 = pnand %p4086_p2, %p4080_p10 }
  0x60   : > { %4090 = shalt.err (!%p4087_p3)
}
  0x61   : > { %3934 = dma.hbm_to_vmem [thread:$0]  (!%p4238_p5), %s5600_s7, 16, %s343_s28, [#allocation6]  }
  0x62   : > { %s4145_s12 = smov [#allocation10]   ;;  %s4091_s18 = scalar_lea.hbm %s5603_s10, 2048 }
  0x63   : > { %s368_s13 = sshll.u32 %s4145_s12, 4  ;;  %p4092_p13 = scmp.ne.s32.totalorder %s5603_s10, %s4091_s18  ;;  %s369_s13 = int_to_ptr.vmem [resolvable:$true] %s368_s13 }
  0x64   : > { %p4098_p0 = scmp.lt.u32.totalorder %s4091_s18, %s5603_s10 }
  0x65   : > { %p4094_p2 = pnand %p4092_p13, %p4254_p7 }
  0x67   : > { %p4095_p3 = pneg %p4094_p2 }
  0x69   : > { %p4100_p1 = pnand %p4098_p0, %p4095_p3 }
  0x6b   : > { %4103 = shalt.err (!%p4100_p1)
}
  0x6c   : > { %s4104_s28 = scalar_lea.vmem %s369_s13, 2048  ;;  %p4112_p9 = scmp.lt.s32.totalorder %s369_s13, %s369_s13 }
  0x6d   : > { %p4105_p4 = scmp.ne.s32.totalorder %s369_s13, %s4104_s28  ;;  %p4113_p10 = scmp.lt.s32.totalorder %s4104_s28, %s4104_s28 }
  0x6f   : > { %p4107_p6 = pnand %p4105_p4, %p4254_p7  ;;  %p4114_p11 = por %p4113_p10, %p4112_p9 }
  0x71   : > { %p4108_p8 = pneg %p4107_p6 }
  0x73   : > { %p4115_p12 = pnand %p4114_p11, %p4108_p8 }
  0x75   : > { %4118 = shalt.err (!%p4115_p12)
}
  0x76   : > { %3940 = dma.hbm_to_vmem [thread:$0]  (!%p4238_p5), %s5603_s10, 2048, %s369_s13, [#allocation9], %s4143_s25, %s4143_s25, %s4144_s27  }
  0x77   : > { %p5679_p13 = scmp.ne.s32.totalorder %s5676_s21, 0 }
  0x79   : > { %400 = sbr.rel (%p5679_p13) target bundleno = 1481 (0x5c9), region = 64 }
  0x80   : > { %p5680_p7 = scmp.eq.s32.totalorder %s4221_s20, 0 }
  0x82   : > { %4124 = dma.done.wait (%p5680_p7), [#allocation4], 512   ;;  %p5681_p2 = pmov %p5680_p7 }
  0x84   : > { %4126 = vsyncadd (%p5681_p2), [#allocation4], 4294966784  ;;  %p5682_p3 = pmov %p5681_p2 }
  0x85   : > { %p5683_p0 = pmov %p5681_p2 }
  0x86   : > { %4128 = dma.done.wait (%p5682_p3), [#allocation6], 32  }
  0x87   : > { %4130 = vsyncadd (%p5683_p0), [#allocation6], 4294967264  ;;  %p5684_p1 = pmov %p5683_p0 }
  0x88   : > { %p5685_p5 = pmov %p5683_p0 }
  0x89   : > { %4132 = dma.done.wait (%p5684_p1), [#allocation9], 6144  }
  0x8a   : > { %4134 = vsyncadd (%p5685_p5), [#allocation9], 4294961152  ;;  %p461_p4 = scmp.lt.s32.totalorder %s4221_s20, 1  ;;  %s4146_s27 = smov 1   ;;  %v4430_v4 = vld [vmem:[#allocation8 + $0x80] sm:$0xff]  ;;  %v4432_v5 = vld [vmem:[#allocation8 + $0x88] sm:$0xff] }
  0x8b   : > { %s4147_s12 = smov 2   ;;  %s4148_s13 = smov 127   ;;  %v1247_v6 = vand.u32 4294901760, %v4430_v4  ;;  %v1250_v7 = vand.u32 4294901760, %v4432_v5  ;;  %v4436_v8 = vld [vmem:[#allocation8] sm:$0xff]  ;;  %v4438_v9 = vld [vmem:[#allocation8 + $0x8] sm:$0xff] }
  0x8c   : > { %s5778_s20 = smov (!%p461_p4, %s4221_s20), 1  ;;  %s4149_s14 = smov 126   ;;  %v1199_v10 = vand.u32 4294901760, %v4436_v8  ;;  %v1202_v11 = vand.u32 4294901760, %v4438_v9  ;;  %v4454_v14 = vld [vmem:[#allocation8 + $0x90] sm:$0xff]  ;;  %v4456_v15 = vld [vmem:[#allocation8 + $0x98] sm:$0xff] }
  0x8d   : > { %s3904_s21 = smul.u32 24, %s5778_s20  ;;  %v4450_v12 = vpack.c.bf16 %v1250_v7, %v1247_v6  ;;  %v1253_v16 = vand.u32 4294901760, %v4454_v14  ;;  %v1256_v17 = vand.u32 4294901760, %v4456_v15  ;;  %v4461_v18 = vld [vmem:[#allocation8 + $0x10] sm:$0xff]  ;;  %v4463_v19 = vld [vmem:[#allocation8 + $0x18] sm:$0xff]  ;;  %v1184_v26 = vld [vmem:[#allocation8 + $0xa0] sm:$0xff]  ;;  %v4513_v54 = vsub.f32 %v4430_v4, %v1247_v6 }
  0x8e   : > { %v4452_v13 = vpack.c.bf16 %v1202_v11, %v1199_v10  ;;  %v1205_v20 = vand.u32 4294901760, %v4461_v18  ;;  %v1208_v21 = vand.u32 4294901760, %v4463_v19  ;;  %v1185_v27 = vld [vmem:[#allocation8 + $0xa8] sm:$0xff]  ;;  %v1259_v28 = vand.u32 4294901760, %v1184_v26  ;;  %v1168_v30 = vld [vmem:[#allocation8 + $0x20] sm:$0xff]  ;;  %v1186_v36 = vld [vmem:[#allocation8 + $0xb0] sm:$0xff] }
  0x8f   : > { %s4392_s25 = scalar_lea.vmem %s5593_s0, %s3904_s21  ;;  %3560 = vmatprep.subr.bf16.mxu1 %v4450_v12  ;;  %v4478_v24 = vpack.c.bf16 %v1256_v17, %v1253_v16  ;;  %v1262_v29 = vand.u32 4294901760, %v1185_v27  ;;  %v1169_v31 = vld [vmem:[#allocation8 + $0x28] sm:$0xff]  ;;  %v1211_v32 = vand.u32 4294901760, %v1168_v30  ;;  %v1187_v37 = vld [vmem:[#allocation8 + $0xb8] sm:$0xff]  ;;  %v1265_v38 = vand.u32 4294901760, %v1186_v36  ;;  %v1170_v40 = vld [vmem:[#allocation8 + $0x30] sm:$0xff]  ;;  %s475_s24 = scalar_lea.vmem %s5604_s11, %s3904_s21 }
  0x90   : > { %v4395_v0 = vld [vmem:[%s4392_s25] sm:$0xff]  ;;  %v4402_v1 = vld [vmem:[%s4392_s25 + $0x8] sm:$0xff]  ;;  %3562 = vmatpush3.bf16.msra.mxu1 %v4452_v13  ;;  %v4484_v25 = vpack.c.bf16 %v1208_v21, %v1205_v20  ;;  %v1214_v33 = vand.u32 4294901760, %v1169_v31  ;;  %v1268_v39 = vand.u32 4294901760, %v1187_v37  ;;  %v1171_v41 = vld [vmem:[#allocation8 + $0x38] sm:$0xff]  ;;  %v1217_v42 = vand.u32 4294901760, %v1170_v40 }
  0x91   : > { %491 = vrot.lane.b32.xlu1 %v4395_v0, %s4146_s27  ;;  %478 = vrot.lane.b32.xlu0 %v4395_v0, %s4147_s12  ;;  %v4417_v2 = vld [vmem:[%s4392_s25 + $0x9] sm:$0xff]  ;;  %v4420_v3 = vld [vmem:[%s4392_s25 + $0x1] sm:$0xff]  ;;  %v4492_v34 = vpack.c.bf16 %v1262_v29, %v1259_v28  ;;  %v1220_v43 = vand.u32 4294901760, %v1171_v41  ;;  %v4518_v55 = vsub.f32 %v4432_v5, %v1250_v7  ;;  %v4522_v56 = vsub.f32 %v4436_v8, %v1199_v10  ;;  %v1191_v61 = vld [vmem:[#allocation8 + $0xd8] sm:$0xff]  ;;  %s3018_s16 = sshll.u32 %s5778_s20, 5  ;;  %s4151_s28 = smov 4  }
  0x92   : > { %5686 = vst [vmem:[#allocation14_spill] sm:$0xff] %v4417_v2  ;;  %5687 = vst [vmem:[#allocation15_spill] sm:$0xff] %v4420_v3  ;;  %v4472_v22 = vld [vmem:[%s4392_s25 + $0xa] sm:$0xff]  ;;  %v4475_v23 = vld [vmem:[%s4392_s25 + $0x2] sm:$0xff]  ;;  %3564 = vmatprep.subr.bf16.mxu1 %v4478_v24  ;;  %v4494_v35 = vpack.c.bf16 %v1214_v33, %v1211_v32  ;;  %v4502_v44 = vpack.c.bf16 %v1268_v39, %v1265_v38  ;;  %v4525_v57 = vsub.f32 %v4438_v9, %v1202_v11  ;;  %s4584_s19 = scalar_lea.vmem %s5594_s1, %s3018_s16  ;;  %s4152_s29 = smov 124   ;;  %vm4154_vm1 = vmmov 0  }
  0x93   : > { %5688 = vst [vmem:[#allocation16_spill] sm:$0xff] %v4472_v22  ;;  %5689 = vst [vmem:[#allocation17_spill] sm:$0xff] %v4475_v23  ;;  %v4504_v45 = vpack.c.bf16 %v1220_v43, %v1217_v42  ;;  %v1188_v46 = vld [vmem:[#allocation8 + $0xc0] sm:$0xff]  ;;  %v1189_v47 = vld [vmem:[#allocation8 + $0xc8] sm:$0xff]  ;;  %v4533_v62 = vsub.f32 %v4454_v14, %v1253_v16  ;;  %v4536_v63 = vsub.f32 %v4456_v15, %v1256_v17  ;;  %v1280_v5 = vand.u32 4294901760, %v1191_v61 }
  0x94   : > { %3566 = vmatpush3.bf16.msra.mxu1 %v4484_v25  ;;  %5690 = vst [vmem:[#allocation18_spill] sm:$0xff] %v4492_v34  ;;  %5691 = vst [vmem:[#allocation19_spill] sm:$0xff] %v4494_v35  ;;  %v1271_v48 = vand.u32 4294901760, %v1188_v46  ;;  %v1274_v49 = vand.u32 4294901760, %v1189_v47  ;;  %v1172_v50 = vld [vmem:[#allocation8 + $0x40] sm:$0xff]  ;;  %v1173_v51 = vld [vmem:[#allocation8 + $0x48] sm:$0xff]  ;;  %v4545_v8 = vsub.f32 %v4461_v18, %v1205_v20  ;;  %v4550_v9 = vsub.f32 %v4463_v19, %v1208_v21 }
  0x95   : > { %493 = vrot.lane.b32.xlu1 %v4402_v1, %s4146_s27  ;;  %480 = vrot.lane.b32.xlu0 %v4402_v1, %s4147_s12  ;;  %5692 = vst [vmem:[#allocation20_spill] sm:$0xff] %v4502_v44  ;;  %5693 = vst [vmem:[#allocation21_spill] sm:$0xff] %v4504_v45  ;;  %v1223_v52 = vand.u32 4294901760, %v1172_v50  ;;  %v1226_v53 = vand.u32 4294901760, %v1173_v51  ;;  %v1190_v60 = vld [vmem:[#allocation8 + $0xd0] sm:$0xff]  ;;  %v1175_v7 = vld [vmem:[#allocation8 + $0x58] sm:$0xff]  ;;  %v4558_v16 = vsub.f32 %v1184_v26, %v1259_v28 }
  0x96   : > { %3568 = vmatprep.subr.bf16.mxu1 %v4492_v34  ;;  %v4528_v58 = vpack.c.bf16 %v1274_v49, %v1271_v48  ;;  %v1277_v4 = vand.u32 4294901760, %v1190_v60  ;;  %v1174_v6 = vld [vmem:[#allocation8 + $0x50] sm:$0xff]  ;;  %v1232_v11 = vand.u32 4294901760, %v1175_v7  ;;  %v4556_v15 = vld [vmem:[%s4392_s25 + $0x3] sm:$0xff]  ;;  %v4560_v17 = vsub.f32 %v1185_v27, %v1262_v29 }
  0x97   : > { %v4530_v59 = vpack.c.bf16 %v1226_v53, %v1223_v52  ;;  %v1229_v10 = vand.u32 4294901760, %v1174_v6  ;;  %v4553_v14 = vld [vmem:[%s4392_s25 + $0xb] sm:$0xff]  ;;  %5697 = vst [vmem:[#allocation25_spill] sm:$0xff] %v4556_v15  ;;  %v4564_v18 = vsub.f32 %v1169_v31, %v1214_v33  ;;  %v4567_v20 = vsub.f32 %v1186_v36, %v1265_v38  ;;  %v1192_v26 = vld [vmem:[#allocation8 + $0xe0] sm:$0xff] }
  0x98   : > { %3570 = vmatpush3.bf16.msra.mxu1 %v4494_v35  ;;  %5694 = vst [vmem:[#allocation22_spill] sm:$0xff] %v4528_v58  ;;  %5696 = vst [vmem:[#allocation24_spill] sm:$0xff] %v4553_v14  ;;  %v4569_v19 = vsub.f32 %v1187_v37, %v1268_v39  ;;  %v4572_v21 = vpack.c.bf16 %v1280_v5, %v1277_v4  ;;  %v1193_v28 = vld [vmem:[#allocation8 + $0xe8] sm:$0xff]  ;;  %v4577_v27 = vsub.f32 %v1170_v40, %v1217_v42  ;;  %vm2800_vm3 = vcmask 1040384  }
  0x99   : > { %515 = vrot.lane.b32.xlu1 %v4402_v1, %s4148_s13  ;;  %513 = vrot.lane.b32.xlu0 %v4395_v0, %s4148_s13  ;;  %5695 = vst [vmem:[#allocation23_spill] sm:$0xff] %v4530_v59  ;;  %v4579_v29 = vsub.f32 %v1171_v41, %v1220_v43  ;;  %v1286_v31 = vand.u32 4294901760, %v1193_v28  ;;  %v1177_v33 = vld [vmem:[#allocation8 + $0x68] sm:$0xff]  ;;  %v4590_v36 = vsub.f32 %v1188_v46, %v1271_v48  ;;  %v1194_v48 = vld [vmem:[#allocation8 + $0xf0] sm:$0xff] }
  0x9a   : > { %3572 = vmatprep.subr.bf16.mxu1 %v4502_v44  ;;  %5698 = vst [vmem:[#allocation26_spill] sm:$0xff] %v4572_v21  ;;  %v4592_v37 = vsub.f32 %v1189_v47, %v1274_v49  ;;  %v1238_v39 = vand.u32 4294901760, %v1177_v33  ;;  %v1161_v40 = vld [vmem:[%s4584_s19 + $0x8] sm:$0xff]  ;;  %v4595_v41 = vsub.f32 %v1172_v50, %v1223_v52  ;;  %v4597_v42 = vsub.f32 %v1173_v51, %v1226_v53  ;;  %v1195_v49 = vld [vmem:[#allocation8 + $0xf8] sm:$0xff] }
  0x9b   : > { %v4600_v43 = vsub.f32 %v1190_v60, %v1277_v4  ;;  %v1289_v51 = vand.u32 4294901760, %v1194_v48  ;;  %v1292_v52 = vand.u32 4294901760, %v1195_v49  ;;  %v1178_v53 = vld [vmem:[#allocation8 + $0x70] sm:$0xff]  ;;  %v1179_v60 = vld [vmem:[#allocation8 + $0x78] sm:$0xff]  ;;  %v4626_v35 = vsub.f32 %v1174_v6, %v1229_v10 }
  0x9c   : > { %3574 = vmatpush3.bf16.msra.mxu1 %v4504_v45  ;;  %v4610_v45 = vand.u32 4294901760, %v1161_v40  ;;  %v4628_v34 = vsub.f32 %v1175_v7, %v1232_v11  ;;  %v5705_v7 = vand.u32 4294901760, %v4518_v55 }
  0x9d   : > { %528 = vrot.lane.b32.xlu1 %v4402_v1, %s4149_s14  ;;  %526 = vrot.lane.b32.xlu0 %v4395_v0, %s4149_s14 }
  0x9e   : > { %3576 = vmatprep.subr.bf16.mxu1 %v4528_v58  ;;  %v1160_v58 = vld [vmem:[%s4584_s19] sm:$0xff]  ;;  %1991 = vmatprep.mubr.f32.mxu0 %v4610_v45 }
  0x9f   : > { %v4612_v50 = vand.u32 4294901760, %v1160_v58 }
  0xa0   : > { %3578 = vmatpush3.bf16.msra.mxu1 %v4530_v59  ;;  %v4602_v59 = vsub.f32 %v1191_v61, %v1280_v5  ;;  %v1241_v5 = vand.u32 4294901760, %v1178_v53  ;;  %v4633_v61 = vsub.f32 %v1193_v28, %v1286_v31  ;;  %v4665_v28 = vsub.f32 %v1194_v48, %v1289_v51 }
  0xa1   : > { %543 = vrot.lane.b32.xlu1 %v4417_v2, %s4147_s12  ;;  %541 = vrot.lane.b32.xlu0 %v4420_v3, %s4147_s12  ;;  %v4624_v44 = vsub.f32 %v1160_v58, %v4612_v50  ;;  %v5704_v58 = vand.u32 4294901760, %v4513_v54  ;;  %v5708_v48 = vand.u32 4294901760, %v4525_v57 }
  0xa2   : > { %3580 = vmatprep.subr.bf16.mxu1 %v4572_v21  ;;  %v4621_v21 = vsub.f32 %v1161_v40, %v4610_v45 }
  0xa3   : > { %v1441_v6 = vsub.f32 %v4513_v54, %v5704_v58 }
  0xa4   : > { %v5629_v40 = vand.u32 4294901760, %v4621_v21 }
  0xa5   : > { %556 = vrot.lane.b32.xlu1 %v4417_v2, %s4146_s27  ;;  %554 = vrot.lane.b32.xlu0 %v4420_v3, %s4146_s27 }
  0xa9   : > { %578 = vrot.lane.b32.xlu1 %v4417_v2, %s4148_s13  ;;  %576 = vrot.lane.b32.xlu0 %v4420_v3, %s4148_s13 }
  0xad   : > { %591 = vrot.lane.b32.xlu1 %v4417_v2, %s4149_s14  ;;  %589 = vrot.lane.b32.xlu0 %v4420_v3, %s4149_s14  ;;  %v4636_v3 = vpack.c.bf16 %v1292_v52, %v1289_v51  ;;  %v5709_v51 = vand.u32 4294901760, %v4533_v62 }
  0xaf   : > { %5702 = vst [vmem:[#allocation30_spill] sm:$0xff] %v4636_v3 }
  0xb1   : > { %606 = vrot.lane.b32.xlu1 %v4472_v22, %s4147_s12  ;;  %604 = vrot.lane.b32.xlu0 %v4475_v23, %s4147_s12 }
  0xb5   : > { %619 = vrot.lane.b32.xlu1 %v4472_v22, %s4146_s27  ;;  %617 = vrot.lane.b32.xlu0 %v4475_v23, %s4146_s27 }
  0xb9   : > { %641 = vrot.lane.b32.xlu1 %v4472_v22, %s4148_s13  ;;  %639 = vrot.lane.b32.xlu0 %v4475_v23, %s4148_s13 }
  0xbd   : > { %654 = vrot.lane.b32.xlu1 %v4472_v22, %s4149_s14  ;;  %652 = vrot.lane.b32.xlu0 %v4475_v23, %s4149_s14  ;;  %v4562_v23 = vsub.f32 %v1168_v30, %v1211_v32  ;;  %v4574_v22 = vpack.c.bf16 %v1232_v11, %v1229_v10  ;;  %v1283_v30 = vand.u32 4294901760, %v1192_v26  ;;  %v1176_v32 = vld [vmem:[#allocation8 + $0x60] sm:$0xff]  ;;  %v1448_v10 = vsub.f32 %v4518_v55, %v5705_v7 }
  0xbe   : > { %v1235_v38 = vand.u32 4294901760, %v1176_v32 }
  0xbf   : > { %5699 = vst [vmem:[#allocation27_spill] sm:$0xff] %v4574_v22  ;;  %3582 = vmatpush3.bf16.msra.mxu1 %v4574_v22  ;;  %v4606_v46 = vpack.c.bf16 %v1286_v31, %v1283_v30  ;;  %v1244_v22 = vand.u32 4294901760, %v1179_v60  ;;  %v4631_v4 = vsub.f32 %v1192_v26, %v1283_v30  ;;  %v1297_v30 = vsub.f32 %v4621_v21, %v5629_v40 }
  0xc0   : > { %v4608_v47 = vpack.c.bf16 %v1238_v39, %v1235_v38  ;;  %v1442_v31 = vand.u32 4294901760, %v1441_v6  ;;  %v4660_v11 = vsub.f32 %v1176_v32, %v1235_v38  ;;  %v4662_v26 = vsub.f32 %v1177_v33, %v1238_v39 }
  0xc1   : > { %669 = vrot.lane.b32.xlu1 %v4553_v14, %s4147_s12  ;;  %667 = vrot.lane.b32.xlu0 %v4556_v15, %s4147_s12  ;;  %5700 = vst [vmem:[#allocation28_spill] sm:$0xff] %v4606_v46  ;;  %v4638_v2 = vpack.c.bf16 %v1244_v22, %v1241_v5  ;;  %v4670_v40 = vsub.f32 %v1178_v53, %v1241_v5  ;;  %v1298_v58 = vand.u32 4294901760, %v1297_v30  ;;  %v1449_v7 = vand.u32 4294901760, %v1448_v10  ;;  %v4696_v30 = vld [vmem:[%s4392_s25 + $0xc] sm:$0xff] }
  0xc2   : > { %5701 = vst [vmem:[#allocation29_spill] sm:$0xff] %v4608_v47  ;;  %3584 = vmatprep.subr.bf16.mxu1 %v4606_v46  ;;  %v4672_v6 = vsub.f32 %v1179_v60, %v1244_v22  ;;  %v5706_v32 = vand.u32 4294901760, %v4624_v44  ;;  %v5707_v38 = vand.u32 4294901760, %v4522_v56  ;;  %v5710_v53 = vand.u32 4294901760, %v4536_v63  ;;  %5711 = vst [vmem:[#allocation32_spill] sm:$0xff] %v4696_v30 }
  0xc3   : > { %3586 = vmatpush3.bf16.msra.mxu1 %v4608_v47  ;;  %5703 = vst [vmem:[#allocation31_spill] sm:$0xff] %v4638_v2  ;;  %v4667_v47 = vsub.f32 %v1195_v49, %v1292_v52  ;;  %v1336_v49 = vsub.f32 %v4525_v57, %v5708_v48  ;;  %v1455_v52 = vsub.f32 %v4533_v62, %v5709_v51  ;;  %v5640_v5 = vand.u32 4294901760, %v4545_v8 }
  0xc4   : > { %3588 = vmatprep.subr.bf16.mxu1 %v4636_v3  ;;  %v1303_v33 = vsub.f32 %v4624_v44, %v5706_v32  ;;  %v1329_v39 = vsub.f32 %v4522_v56, %v5707_v38  ;;  %v3591_v22 = vpack.c.bf16 %v1449_v7, %v1442_v31  ;;  %v1462_v60 = vsub.f32 %v4536_v63, %v5710_v53  ;;  %v4699_v32 = vld [vmem:[%s4392_s25 + $0x4] sm:$0xff] }
  0xc5   : > { %682 = vrot.lane.b32.xlu1 %v4553_v14, %s4146_s27  ;;  %680 = vrot.lane.b32.xlu0 %v4556_v15, %s4146_s27  ;;  %v5635_v10 = vand.u32 4294901760, %v4550_v9  ;;  %5712 = vst [vmem:[#allocation33_spill] sm:$0xff] %v4699_v32  ;;  %v1337_v51 = vand.u32 4294901760, %v1336_v49  ;;  %v1343_v31 = vsub.f32 %v4545_v8, %v5640_v5  ;;  %v5634_v53 = vand.u32 4294901760, %v4558_v16 }
  0xc6   : > { %1299 = vmatprep.mubr.f32.mxu1 %v1298_v58  ;;  %v1304_v38 = vand.u32 4294901760, %v1303_v33  ;;  %v1330_v48 = vand.u32 4294901760, %v1329_v39  ;;  %v5636_v58 = vand.u32 4294901760, %v4560_v17  ;;  %v5637_v33 = vand.u32 4294901760, %v4562_v23 }
  0xc7   : > { %3590 = vmatpush3.bf16.msra.mxu1 %v4638_v2  ;;  %v1350_v7 = vsub.f32 %v4550_v9, %v5635_v10  ;;  %v5639_v39 = vand.u32 4294901760, %v4564_v18 }
  0xc8   : > { %3592 = vmatprep.subr.bf16.mxu1 %v3591_v22  ;;  %v3593_v2 = vpack.c.bf16 %v1337_v51, %v1330_v48  ;;  %v1357_v48 = vsub.f32 %v4562_v23, %v5637_v33 }
  0xc9   : > { %704 = vrot.lane.b32.xlu1 %v4553_v14, %s4148_s13  ;;  %702 = vrot.lane.b32.xlu0 %v4556_v15, %s4148_s13  ;;  %v1351_v22 = vand.u32 4294901760, %v1350_v7  ;;  %v1364_v51 = vsub.f32 %v4564_v18, %v5639_v39  ;;  %v5641_v7 = vand.u32 4294901760, %v4569_v19 }
  0xca   : > { %1305 = vmatmul.mubr.f32.vlgmr.msra.gmra.mrb[0].mxu1 %v1304_v38  ;;  %v1476_v38 = vsub.f32 %v4560_v17, %v5636_v58  ;;  %v1358_v10 = vand.u32 4294901760, %v1357_v48 }
  0xcb   : > { %3594 = vmatpush3.bf16.msra.mxu1 %v3593_v2  ;;  %v5642_v2 = vand.u32 4294901760, %v4577_v27  ;;  %v1365_v58 = vand.u32 4294901760, %v1364_v51 }
  0xcd   : > { %717 = vrot.lane.b32.xlu1 %v4553_v14, %s4149_s14  ;;  %715 = vrot.lane.b32.xlu0 %v4556_v15, %s4149_s14  ;;  %v1456_v14 = vand.u32 4294901760, %v1455_v52  ;;  %v1463_v15 = vand.u32 4294901760, %v1462_v60  ;;  %v1344_v52 = vand.u32 4294901760, %v1343_v31  ;;  %v1469_v60 = vsub.f32 %v4558_v16, %v5634_v53 }
  0xce   : > { %v1477_v53 = vand.u32 4294901760, %v1476_v38  ;;  %v3601_v48 = vpack.c.bf16 %v1365_v58, %v1358_v10  ;;  %v5646_v10 = vand.u32 4294901760, %v4595_v41  ;;  %v5650_v58 = vand.u32 4294901760, %v4600_v43 }
  0xcf   : > { %v3595_v49 = vpack.c.bf16 %v1463_v15, %v1456_v14  ;;  %v5638_v14 = vand.u32 4294901760, %v4567_v20  ;;  %v3597_v15 = vpack.c.bf16 %v1351_v22, %v1344_v52  ;;  %v1470_v31 = vand.u32 4294901760, %v1469_v60 }
  0xd0   : > { %v1371_v52 = vsub.f32 %v4577_v27, %v5642_v2  ;;  %v5645_v22 = vand.u32 4294901760, %v4579_v29  ;;  %v5644_v60 = vand.u32 4294901760, %v4590_v36 }
  0xd1   : > { %732 = vrot.lane.b32.xlu1 %v4696_v30, %s4147_s12  ;;  %730 = vrot.lane.b32.xlu0 %v4699_v32, %s4147_s12  ;;  %v1483_v33 = vsub.f32 %v4567_v20, %v5638_v14  ;;  %v3599_v38 = vpack.c.bf16 %v1477_v53, %v1470_v31  ;;  %v5643_v14 = vand.u32 4294901760, %v4592_v37  ;;  %v5653_v53 = vand.u32 4294901760, %v4597_v42 }
  0xd2   : > { %3596 = vmatprep.subr.bf16.mxu1 %v3595_v49  ;;  %v1490_v49 = vsub.f32 %v4569_v19, %v5641_v7  ;;  %v1372_v5 = vand.u32 4294901760, %v1371_v52  ;;  %v1378_v7 = vsub.f32 %v4579_v29, %v5645_v22  ;;  %v1497_v2 = vsub.f32 %v4590_v36, %v5644_v60 }
  0xd3   : > { %3598 = vmatpush3.bf16.msra.mxu1 %v3597_v15  ;;  %v1484_v51 = vand.u32 4294901760, %v1483_v33  ;;  %v1504_v15 = vsub.f32 %v4592_v37, %v5643_v14  ;;  %v5649_v52 = vand.u32 4294901760, %v4602_v59  ;;  %v1385_v14 = vsub.f32 %v4595_v41, %v5646_v10 }
  0xd4   : > { %v1491_v39 = vand.u32 4294901760, %v1490_v49  ;;  %3600 = vmatprep.subr.bf16.mxu1 %v3599_v38  ;;  %v1379_v31 = vand.u32 4294901760, %v1378_v7  ;;  %v1498_v49 = vand.u32 4294901760, %v1497_v2  ;;  %v1392_v60 = vsub.f32 %v4597_v42, %v5653_v53 }
  0xd5   : > { %745 = vrot.lane.b32.xlu1 %v4696_v30, %s4146_s27  ;;  %743 = vrot.lane.b32.xlu0 %v4699_v32, %s4146_s27  ;;  %v1505_v38 = vand.u32 4294901760, %v1504_v15  ;;  %v1511_v22 = vsub.f32 %v4600_v43, %v5650_v58  ;;  %v1518_v7 = vsub.f32 %v4602_v59, %v5649_v52  ;;  %v5651_v2 = vand.u32 4294901760, %v4626_v35 }
  0xd6   : > { %v3603_v33 = vpack.c.bf16 %v1491_v39, %v1484_v51  ;;  %v3605_v39 = vpack.c.bf16 %v1379_v31, %v1372_v5  ;;  %v1386_v15 = vand.u32 4294901760, %v1385_v14  ;;  %v1393_v10 = vand.u32 4294901760, %v1392_v60  ;;  %v1163_v14 = vld [vmem:[%s4584_s19 + $0x18] sm:$0xff] }
  0xd7   : > { %3602 = vmatpush3.bf16.msra.mxu1 %v3601_v48  ;;  %v5652_v48 = vand.u32 4294901760, %v4628_v34  ;;  %v3607_v51 = vpack.c.bf16 %v1505_v38, %v1498_v49  ;;  %v1512_v3 = vand.u32 4294901760, %v1511_v22  ;;  %v1399_v5 = vsub.f32 %v4626_v35, %v5651_v2 }
  0xd8   : > { %3604 = vmatprep.subr.bf16.mxu1 %v3603_v33  ;;  %v1519_v33 = vand.u32 4294901760, %v1518_v7  ;;  %v5654_v49 = vand.u32 4294901760, %v4631_v4  ;;  %v3609_v22 = vpack.c.bf16 %v1393_v10, %v1386_v15  ;;  %v5655_v60 = vand.u32 4294901760, %v4633_v61 }
  0xd9   : > { %767 = vrot.lane.b32.xlu1 %v4696_v30, %s4148_s13  ;;  %765 = vrot.lane.b32.xlu0 %v4699_v32, %s4148_s13  ;;  %v1406_v31 = vsub.f32 %v4628_v34, %v5652_v48  ;;  %v5661_v38 = vand.u32 4294901760, %v4660_v11  ;;  %v5658_v7 = vand.u32 4294901760, %v4662_v26  ;;  %v1400_v58 = vand.u32 4294901760, %v1399_v5 }
  0xda   : > { %v3611_v52 = vpack.c.bf16 %v1519_v33, %v1512_v3  ;;  %v1525_v48 = vsub.f32 %v4631_v4, %v5654_v49  ;;  %v1532_v53 = vsub.f32 %v4633_v61, %v5655_v60  ;;  %v1162_v3 = vld [vmem:[%s4584_s19 + $0x10] sm:$0xff]  ;;  %v5659_v5 = vand.u32 4294901760, %v4665_v28 }
  0xdb   : > { %3606 = vmatpush3.bf16.msra.mxu1 %v3605_v39  ;;  %v1407_v2 = vand.u32 4294901760, %v1406_v31  ;;  %v1413_v10 = vsub.f32 %v4660_v11, %v5661_v38  ;;  %v1420_v39 = vsub.f32 %v4662_v26, %v5658_v7  ;;  %v5660_v31 = vand.u32 4294901760, %v4667_v47 }
  0xdc   : > { %3608 = vmatprep.subr.bf16.mxu1 %v3607_v51  ;;  %v4804_v51 = vand.u32 4294901760, %v1163_v14  ;;  %v1526_v33 = vand.u32 4294901760, %v1525_v48  ;;  %v1533_v49 = vand.u32 4294901760, %v1532_v53  ;;  %v1539_v7 = vsub.f32 %v4665_v28, %v5659_v5 }
  0xdd   : > { %780 = vrot.lane.b32.xlu1 %v4696_v30, %s4149_s14  ;;  %778 = vrot.lane.b32.xlu0 %v4699_v32, %s4149_s14  ;;  %v3613_v15 = vpack.c.bf16 %v1407_v2, %v1400_v58  ;;  %v1414_v60 = vand.u32 4294901760, %v1413_v10  ;;  %v1421_v32 = vand.u32 4294901760, %v1420_v39  ;;  %v1546_v58 = vsub.f32 %v4667_v47, %v5660_v31 }
  0xde   : > { %v4810_v30 = vsub.f32 %v1163_v14, %v4804_v51  ;;  %v4818_v2 = vand.u32 4294901760, %v1162_v3  ;;  %v1426_v48 = vand.u32 4294901760, %v4670_v40  ;;  %v1433_v10 = vand.u32 4294901760, %v4672_v6 }
  0xdf   : > { %3610 = vmatpush3.bf16.msra.mxu1 %v3609_v22  ;;  %v3615_v22 = vpack.c.bf16 %v1533_v49, %v1526_v33  ;;  %v1540_v14 = vand.u32 4294901760, %v1539_v7  ;;  %v1547_v39 = vand.u32 4294901760, %v1546_v58  ;;  %v3617_v31 = vpack.c.bf16 %v1421_v32, %v1414_v60 }
  0xe0   : > { %3612 = vmatprep.subr.bf16.mxu1 %v3611_v52  ;;  %v5664_v53 = vand.u32 4294901760, %v4810_v30  ;;  %v4824_v52 = vsub.f32 %v1162_v3, %v4818_v2  ;;  %v1427_v5 = vsub.f32 %v4670_v40, %v1426_v48  ;;  %v1434_v49 = vsub.f32 %v4672_v6, %v1433_v10 }
  0xe1   : > { %v3619_v7 = vpack.c.bf16 %v1547_v39, %v1540_v14  ;;  %v5714_v14 = vand.u32 4294901760, %v4518_v55 }
  0xe2   : > { %v1312_v38 = vsub.f32 %v4810_v30, %v5664_v53  ;;  %v1317_v33 = vand.u32 4294901760, %v4824_v52  ;;  %v1428_v3 = vand.u32 4294901760, %v1427_v5  ;;  %v1435_v46 = vand.u32 4294901760, %v1434_v49 }
  0xe3   : > { %3614 = vmatpush3.bf16.msra.mxu1 %v3613_v15  ;;  %v3623_v53 = vpack.c.bf16 %v4518_v55, %v4513_v54  ;;  %v5716_v5 = vand.u32 4294901760, %v4525_v57  ;;  %v3627_v55 = vpack.c.bf16 %v4536_v63, %v4533_v62 }
  0xe4   : > { %3616 = vmatprep.subr.bf16.mxu1 %v3615_v22  ;;  %v1313_v58 = vand.u32 4294901760, %v1312_v38  ;;  %v1318_v15 = vsub.f32 %v4824_v52, %v1317_v33  ;;  %v3621_v32 = vpack.c.bf16 %v1435_v46, %v1428_v3  ;;  %v5713_v22 = vand.u32 4294901760, %v4513_v54 }
  0xe5   : > { %v5715_v38 = vand.u32 4294901760, %v4522_v56  ;;  %v5718_v46 = vand.u32 4294901760, %v4536_v63  ;;  %v3625_v54 = vpack.c.bf16 %v4525_v57, %v4522_v56  ;;  %v5719_v3 = vand.u32 4294901760, %v4545_v8 }
  0xe6   : > { %1314 = vmatprep.mubr.f32.mxu1 %v1313_v58  ;;  %v1319_v60 = vand.u32 4294901760, %v1318_v15  ;;  %v3687_v39 = vpack.c.bf16 %v5714_v14, %v5713_v22  ;;  %v5720_v58 = vand.u32 4294901760, %v4550_v9  ;;  %v3629_v56 = vpack.c.bf16 %v4550_v9, %v4545_v8 }
  0xe7   : > { %3618 = vmatpush3.bf16.msra.mxu1 %v3617_v31  ;;  %v3689_v49 = vpack.c.bf16 %v5716_v5, %v5715_v38  ;;  %v5717_v31 = vand.u32 4294901760, %v4533_v62  ;;  %v3631_v57 = vpack.c.bf16 %v4560_v17, %v4558_v16  ;;  %v5723_v62 = vand.u32 4294901760, %v4562_v23 }
  0xe8   : > { %3620 = vmatprep.subr.bf16.mxu1 %v3619_v7  ;;  %1320 = vmatmul.mubr.f32.gmra.mrb[2].mxu1 %v1319_v60  ;;  %v3693_v15 = vpack.c.bf16 %v5720_v58, %v5719_v3  ;;  %v5722_v60 = vand.u32 4294901760, %v4560_v17  ;;  %v5724_v63 = vand.u32 4294901760, %v4564_v18  ;;  %v5725_v14 = vand.u32 4294901760, %v4567_v20 }
  0xe9   : > { %v3691_v7 = vpack.c.bf16 %v5718_v46, %v5717_v31  ;;  %1550 = vmatprep.mubr.f32.mxu1 %v4610_v45  ;;  %3688 = vmatprep.subr.bf16.mxu0 %v3687_v39  ;;  %v5726_v39 = vand.u32 4294901760, %v4569_v19  ;;  %v3633_v9 = vpack.c.bf16 %v4564_v18, %v4562_v23  ;;  %v5727_v17 = vand.u32 4294901760, %v4577_v27 }
  0xea   : > { %3690 = vmatpush3.bf16.msra.mxu0 %v3689_v49  ;;  %v5728_v38 = vand.u32 4294901760, %v4579_v29  ;;  %v5729_v49 = vand.u32 4294901760, %v4590_v36  ;;  %v5730_v31 = vand.u32 4294901760, %v4592_v37  ;;  %v3637_v23 = vpack.c.bf16 %v4579_v29, %v4577_v27 }
  0xeb   : > { %3622 = vmatpush3.bf16.msra.mxu1 %v3621_v32  ;;  %3692 = vmatprep.subr.bf16.mxu0 %v3691_v7  ;;  %v5721_v32 = vand.u32 4294901760, %v4558_v16  ;;  %v3699_v8 = vpack.c.bf16 %v5726_v39, %v5725_v14  ;;  %v3635_v16 = vpack.c.bf16 %v4569_v19, %v4567_v20  ;;  %v3639_v18 = vpack.c.bf16 %v4592_v37, %v4590_v36  ;;  %v2962_v14 = vld [vmem:[#allocation3] ss:$0 sm:$0xff] }
  0xec   : > { %3624 = vmatprep.subr.bf16.mxu1 %v3623_v53  ;;  %v3697_v53 = vpack.c.bf16 %v5724_v63, %v5723_v62  ;;  %v3701_v5 = vpack.c.bf16 %v5728_v38, %v5727_v17  ;;  %v3703_v46 = vpack.c.bf16 %v5730_v31, %v5729_v49  ;;  %v5731_v20 = vand.u32 4294901760, %v4595_v41  ;;  %v2965_v31 = vld [vmem:[#allocation3 + $0x3] ss:$0 sm:$0xff] }
  0xed   : > { %v3695_v22 = vpack.c.bf16 %v5722_v60, %v5721_v32  ;;  %v5732_v19 = vand.u32 4294901760, %v4597_v42  ;;  %v3641_v27 = vpack.c.bf16 %v4597_v42, %v4595_v41  ;;  %v3643_v29 = vpack.c.bf16 %v4602_v59, %v4600_v43 }
  0xee   : > { %1552 = vmatmul.mubr.f32.vlgmr.msra.gmra.mrb[4].mxu1 %v4612_v50  ;;  %3694 = vmatpush3.bf16.msra.mxu0 %v3693_v15  ;;  %v5735_v36 = vand.u32 4294901760, %v4626_v35  ;;  %v5736_v37 = vand.u32 4294901760, %v4628_v34  ;;  %v5737_v15 = vand.u32 4294901760, %v4631_v4  ;;  %v5738_v32 = vand.u32 4294901760, %v4633_v61 }
  0xef   : > { %3626 = vmatpush3.bf16.msra.mxu1 %v3625_v54  ;;  %1557 = vmatprep.mubr.f32.mxu1 %v4804_v51  ;;  %v3705_v7 = vpack.c.bf16 %v5732_v19, %v5731_v20  ;;  %v5733_v54 = vand.u32 4294901760, %v4600_v43  ;;  %v3645_v41 = vpack.c.bf16 %v4628_v34, %v4626_v35  ;;  %v5739_v43 = vand.u32 4294901760, %v4660_v11  ;;  %v2963_v35 = vld [vmem:[#allocation3 + $0x1] ss:$0 sm:$0xff]  ;;  %v2967_v19 = vld [vmem:[#allocation3 + $0x5] ss:$0 sm:$0xff] }
  0xf0   : > { %3628 = vmatprep.subr.bf16.mxu1 %v3627_v55  ;;  %3696 = vmatprep.subr.bf16.mxu0 %v3695_v22  ;;  %v5734_v55 = vand.u32 4294901760, %v4602_v59  ;;  %v3709_v58 = vpack.c.bf16 %v5736_v37, %v5735_v36  ;;  %v3711_v60 = vpack.c.bf16 %v5738_v32, %v5737_v15  ;;  %v3647_v59 = vpack.c.bf16 %v4633_v61, %v4631_v4  ;;  %v2969_v37 = vld [vmem:[#allocation3 + $0x7] ss:$0 sm:$0xff] }
  0xf1   : > { %v5741_v62 = vand.u32 4294901760, %v4665_v28  ;;  %v5742_v63 = vand.u32 4294901760, %v4667_v47  ;;  %v3649_v34 = vpack.c.bf16 %v4662_v26, %v4660_v11  ;;  %v3651_v4 = vpack.c.bf16 %v4667_v47, %v4665_v28 }
  0xf2   : > { %1559 = vmatmul.mubr.f32.gmra.mrb[6].mxu1 %v4818_v2  ;;  %3698 = vmatpush3.bf16.msra.mxu0 %v3697_v53  ;;  %v3707_v3 = vpack.c.bf16 %v5734_v55, %v5733_v54  ;;  %v3653_v11 = vpack.c.bf16 %v4672_v6, %v4670_v40 }
  0xf3   : > { %3630 = vmatpush3.bf16.msra.mxu1 %v3629_v56  ;;  %1694 = vmatprep.mubr.f32.mxu1 %v4621_v21  ;;  %v5740_v56 = vand.u32 4294901760, %v4662_v26  ;;  %v3715_v53 = vpack.c.bf16 %v5742_v63, %v5741_v62  ;;  %v2964_v26 = vld [vmem:[#allocation3 + $0x2] ss:$0 sm:$0xff] }
  0xf4   : > { %3632 = vmatprep.subr.bf16.mxu1 %v3631_v57  ;;  %3700 = vmatprep.subr.bf16.mxu0 %v3699_v8  ;;  %v510_v28 = vmul.f32 %v2964_v26, %v4402_v1 }
  0xf5   : > { %v3713_v57 = vpack.c.bf16 %v5740_v56, %v5739_v43  ;;  %v5745_v43 = vld [vmem:[#allocation15_spill] sm:$0xff] }
  0xf6   : > { %3702 = vmatpush3.bf16.msra.mxu0 %v3701_v5  ;;  %v572_v56 = vmul.f32 %v2969_v37, %v5745_v43  ;;  %v5757_v43 = vld [vmem:[#allocation29_spill] sm:$0xff] }
  0xf7   : > { %3634 = vmatpush3.bf16.msra.mxu1 %v3633_v9  ;;  %3704 = vmatprep.subr.bf16.mxu0 %v3703_v46 }
  0xf8   : > { %3636 = vmatprep.subr.bf16.mxu1 %v3635_v16  ;;  %v3717_v16 = vpack.c.bf16 %v1433_v10, %v1426_v48  ;;  %v2966_v48 = vld [vmem:[#allocation3 + $0x4] ss:$0 sm:$0xff] }
  0xfa   : > { %3706 = vmatpush3.bf16.msra.mxu0 %v3705_v7 }
  0xfb   : > { %3638 = vmatpush3.bf16.msra.mxu1 %v3637_v23  ;;  %3708 = vmatprep.subr.bf16.mxu0 %v3707_v3  ;;  %v509_v23 = vmul.f32 %v2964_v26, %v4395_v0 }
  0xfc   : > { %3640 = vmatprep.subr.bf16.mxu1 %v3639_v18 }
  0xfe   : > { %3710 = vmatpush3.bf16.msra.mxu0 %v3709_v58  ;;  %v2968_v58 = vld [vmem:[#allocation3 + $0x6] ss:$0 sm:$0xff] }
  0xff   : > { %3642 = vmatpush3.bf16.msra.mxu1 %v3641_v27  ;;  %3712 = vmatprep.subr.bf16.mxu0 %v3711_v60  ;;  %v5743_v60 = vand.u32 4294901760, %v4621_v21  ;;  %v5748_v21 = vld [vmem:[#allocation20_spill] sm:$0xff] }
 0x100   : > { %3644 = vmatprep.subr.bf16.mxu1 %v3643_v29 }
 0x102   : > { %3714 = vmatpush3.bf16.msra.mxu0 %v3713_v57  ;;  %v5746_v57 = vld [vmem:[#allocation18_spill] sm:$0xff] }
 0x103   : > { %v492_v42 = vpop.permute.xlu1 %491  ;;  %v479_v22 = vpop.permute.xlu0 %478  ;;  %3646 = vmatpush3.bf16.msra.mxu1 %v3645_v41  ;;  %3716 = vmatprep.subr.bf16.mxu0 %v3715_v53 }
 0x104   : > { %3648 = vmatprep.subr.bf16.mxu1 %v3647_v59  ;;  %v500_v17 = vmul.f32 %v2963_v35, %v492_v42  ;;  %v487_v38 = vmul.f32 %v2962_v14, %v479_v22  ;;  %v5744_v22 = vld [vmem:[#allocation14_spill] sm:$0xff] }
 0x105   : > { %v573_v59 = vmul.f32 %v2969_v37, %v5744_v22  ;;  %v5755_v37 = vld [vmem:[#allocation17_spill] sm:$0xff] }
 0x106   : > { %3718 = vmatpush3.bf16.msra.mxu0 %v3717_v16  ;;  %v502_v46 = vadd.f32 %v500_v17, %v487_v38  ;;  %v2970_v16 = vld [vmem:[#allocation3 + $0x8] ss:$0 sm:$0xff]  ;;  %v5749_v17 = vld [vmem:[#allocation21_spill] sm:$0xff]  ;;  %v2971_v38 = vld [vmem:[#allocation3 + $0x9] ss:$0 sm:$0xff] }
 0x107   : > { %v494_v39 = vpop.permute.xlu1 %493  ;;  %v481_v61 = vpop.permute.xlu0 %480  ;;  %3650 = vmatpush3.bf16.msra.mxu1 %v3649_v34 }
 0x108   : > { %v501_v8 = vmul.f32 %v2963_v35, %v494_v39  ;;  %v488_v9 = vmul.f32 %v2962_v14, %v481_v61  ;;  %3652 = vmatprep.subr.bf16.mxu1 %v3651_v4  ;;  %v511_v1 = vadd.f32 %v509_v23, %v502_v46  ;;  %v5747_v39 = vld [vmem:[#allocation19_spill] sm:$0xff] }
 0x109   : > { %1993 = vmatmul.mubr.f32.vlgmr.msra.gmra.mrb[0].mxu0 %v4612_v50  ;;  %v5751_v23 = vld [vmem:[#allocation23_spill] sm:$0xff] }
 0x10a   : > { %v503_v47 = vadd.f32 %v501_v8, %v488_v9  ;;  %1998 = vmatprep.mubr.f32.mxu0 %v4804_v51 }
 0x10b   : > { %v516_v5 = vpop.permute.xlu1 %515  ;;  %v514_v49 = vpop.permute.xlu0 %513  ;;  %3654 = vmatpush3.bf16.msra.mxu1 %v3653_v11 }
 0x10c   : > { %3656 = vmatprep.subr.bf16.mxu1 %v4450_v12  ;;  %v512_v40 = vadd.f32 %v510_v28, %v503_v47  ;;  %v523_v6 = vmul.f32 %v2965_v31, %v516_v5  ;;  %v522_v20 = vmul.f32 %v2965_v31, %v514_v49  ;;  %v5750_v5 = vld [vmem:[#allocation22_spill] sm:$0xff] }
 0x10d   : > { %2000 = vmatmul.mubr.f32.gmra.mrb[2].mxu0 %v4818_v2  ;;  %v2972_v28 = vld [vmem:[#allocation3 + $0xa] ss:$0 sm:$0xff] }
 0x10e   : > { %1697 = vmatmul.mubr.f32.vlgmr.msra.gmra.mrb[8].mxu1 %v4624_v44  ;;  %v525_v3 = vadd.f32 %v523_v6, %v512_v40  ;;  %v524_v27 = vadd.f32 %v522_v20, %v511_v1  ;;  %v2974_v1 = vld [vmem:[#allocation3 + $0xc] ss:$0 sm:$0xff] }
 0x10f   : > { %v529_v10 = vpop.permute.xlu1 %528  ;;  %v527_v18 = vpop.permute.xlu0 %526  ;;  %3658 = vmatpush3.bf16.msra.mxu1 %v4452_v13  ;;  %1703 = vmatprep.mubr.f32.mxu1 %v4810_v30 }
 0x110   : > { %v536_v7 = vmul.f32 %v2966_v48, %v529_v10  ;;  %v535_v54 = vmul.f32 %v2966_v48, %v527_v18  ;;  %3660 = vmatprep.subr.bf16.mxu1 %v4478_v24  ;;  %v5752_v18 = vld [vmem:[#allocation26_spill] sm:$0xff] }
 0x112   : > { %1706 = vmatmul.mubr.f32.gmra.mrb[10].mxu1 %v4824_v52  ;;  %v538_v15 = vadd.f32 %v536_v7, %v525_v3  ;;  %v537_v32 = vadd.f32 %v535_v54, %v524_v27  ;;  %v2973_v7 = vld [vmem:[#allocation3 + $0xb] ss:$0 sm:$0xff] }
 0x113   : > { %v544_v0 = vpop.permute.xlu1 %543  ;;  %v542_v55 = vpop.permute.xlu0 %541  ;;  %3662 = vmatpush3.bf16.msra.mxu1 %v4484_v25  ;;  %1810 = vmatprep.mubr.f32.mxu1 %v5743_v60 }
 0x114   : > { %v551_v29 = vmul.f32 %v2967_v19, %v544_v0  ;;  %v550_v36 = vmul.f32 %v2967_v19, %v542_v55  ;;  %3664 = vmatprep.subr.bf16.mxu1 %v5746_v57  ;;  %v5753_v55 = vld [vmem:[#allocation27_spill] sm:$0xff] }
 0x116   : > { %v553_v62 = vadd.f32 %v551_v29, %v538_v15  ;;  %v552_v63 = vadd.f32 %v550_v36, %v537_v32  ;;  %v5754_v29 = vld [vmem:[#allocation16_spill] sm:$0xff] }
 0x117   : > { %v557_v41 = vpop.permute.xlu1 %556  ;;  %v555_v42 = vpop.permute.xlu0 %554  ;;  %3666 = vmatpush3.bf16.msra.mxu1 %v5747_v39  ;;  %v636_v36 = vmul.f32 %v2974_v1, %v5754_v29  ;;  %v5756_v15 = vld [vmem:[#allocation28_spill] sm:$0xff] }
 0x118   : > { %v564_v53 = vmul.f32 %v2968_v58, %v557_v41  ;;  %v563_v34 = vmul.f32 %v2968_v58, %v555_v42  ;;  %3668 = vmatprep.subr.bf16.mxu1 %v5748_v21  ;;  %v635_v58 = vmul.f32 %v2974_v1, %v5755_v37  ;;  %v2980_v37 = vld [vmem:[#allocation3 + $0x12] ss:$0 sm:$0xff] }
 0x11a   : > { %v566_v35 = vadd.f32 %v564_v53, %v553_v62  ;;  %v565_v14 = vadd.f32 %v563_v34, %v552_v63  ;;  %v5758_v63 = vld [vmem:[#allocation30_spill] sm:$0xff] }
 0x11b   : > { %v579_v61 = vpop.permute.xlu1 %578  ;;  %v577_v4 = vpop.permute.xlu0 %576  ;;  %3670 = vmatpush3.bf16.msra.mxu1 %v5749_v17 }
 0x11c   : > { %v575_v8 = vadd.f32 %v573_v59, %v566_v35  ;;  %v574_v9 = vadd.f32 %v572_v56, %v565_v14  ;;  %3672 = vmatprep.subr.bf16.mxu1 %v5750_v5  ;;  %v586_v49 = vmul.f32 %v2970_v16, %v579_v61  ;;  %v585_v47 = vmul.f32 %v2970_v16, %v577_v4  ;;  %v2975_v35 = vld [vmem:[#allocation3 + $0xd] ss:$0 sm:$0xff]  ;;  %v2976_v61 = vld [vmem:[#allocation3 + $0xe] ss:$0 sm:$0xff] }
 0x11d   : > { %v5759_v14 = vld [vmem:[#allocation31_spill] sm:$0xff] }
 0x11e   : > { %v588_v40 = vadd.f32 %v586_v49, %v575_v8  ;;  %v587_v6 = vadd.f32 %v585_v47, %v574_v9  ;;  %v5761_v47 = vand.u32 4294901760, %v4810_v30 }
 0x11f   : > { %v592_v11 = vpop.permute.xlu1 %591  ;;  %v590_v26 = vpop.permute.xlu0 %589  ;;  %3674 = vmatpush3.bf16.msra.mxu1 %v5751_v23 }
 0x120   : > { %v599_v31 = vmul.f32 %v2971_v38, %v592_v11  ;;  %v598_v46 = vmul.f32 %v2971_v38, %v590_v26  ;;  %3676 = vmatprep.subr.bf16.mxu1 %v5752_v18  ;;  %v2977_v38 = vld [vmem:[#allocation3 + $0xf] ss:$0 sm:$0xff]  ;;  %v5760_v11 = vand.u32 4294901760, %v4624_v44 }
 0x122   : > { %v601_v54 = vadd.f32 %v599_v31, %v588_v40  ;;  %v600_v0 = vadd.f32 %v598_v46, %v587_v6  ;;  %v2979_v40 = vld [vmem:[#allocation3 + $0x11] ss:$0 sm:$0xff]  ;;  %v2978_v6 = vld [vmem:[#allocation3 + $0x10] ss:$0 sm:$0xff] }
 0x123   : > { %v607_v48 = vpop.permute.xlu1 %606  ;;  %v605_v10 = vpop.permute.xlu0 %604  ;;  %3678 = vmatpush3.bf16.msra.mxu1 %v5753_v55 }
 0x124   : > { %v614_v20 = vmul.f32 %v2972_v28, %v607_v48  ;;  %v613_v19 = vmul.f32 %v2972_v28, %v605_v10  ;;  %3680 = vmatprep.subr.bf16.mxu1 %v5756_v15 }
 0x126   : > { %v616_v32 = vadd.f32 %v614_v20, %v601_v54  ;;  %v615_v60 = vadd.f32 %v613_v19, %v600_v0  ;;  %v5762_v19 = vld [vmem:[#allocation24_spill] sm:$0xff] }
 0x127   : > { %v620_v3 = vpop.permute.xlu1 %619  ;;  %v618_v27 = vpop.permute.xlu0 %617  ;;  %3682 = vmatpush3.bf16.msra.mxu1 %v5757_v43  ;;  %v699_v1 = vmul.f32 %v2979_v40, %v5762_v19 }
 0x128   : > { %v627_v41 = vmul.f32 %v2973_v7, %v620_v3  ;;  %v626_v42 = vmul.f32 %v2973_v7, %v618_v27  ;;  %3684 = vmatprep.subr.bf16.mxu1 %v5758_v63 }
 0x12a   : > { %v629_v22 = vadd.f32 %v627_v41, %v616_v32  ;;  %v628_v59 = vadd.f32 %v626_v42, %v615_v60  ;;  %v2982_v42 = vld [vmem:[#allocation3 + $0x14] ss:$0 sm:$0xff] }
 0x12b   : > { %v642_v56 = vpop.permute.xlu1 %641  ;;  %v640_v62 = vpop.permute.xlu0 %639  ;;  %3686 = vmatpush3.bf16.msra.mxu1 %v5759_v14 }
 0x12c   : > { %v638_v53 = vadd.f32 %v636_v36, %v629_v22  ;;  %v637_v34 = vadd.f32 %v635_v58, %v628_v59  ;;  %3720 = vmatprep.subr.bf16.mxu1 %v4450_v12  ;;  %v649_v9 = vmul.f32 %v2975_v35, %v642_v56  ;;  %v648_v16 = vmul.f32 %v2975_v35, %v640_v62  ;;  %v2981_v58 = vld [vmem:[#allocation3 + $0x13] ss:$0 sm:$0xff]  ;;  %v2983_v35 = vld [vmem:[#allocation3 + $0x15] ss:$0 sm:$0xff] }
 0x12e   : > { %1814 = vmatmul.mubr.f32.vlgmr.msra.gmra.mrb[12].mxu1 %v5760_v11  ;;  %v651_v46 = vadd.f32 %v649_v9, %v638_v53  ;;  %v650_v48 = vadd.f32 %v648_v16, %v637_v34  ;;  %v2984_v34 = vld [vmem:[#allocation3 + $0x16] ss:$0 sm:$0xff] }
 0x12f   : > { %v655_v4 = vpop.permute.xlu1 %654  ;;  %v653_v8 = vpop.permute.xlu0 %652  ;;  %3722 = vmatpush3.bf16.msra.mxu1 %v4452_v13  ;;  %1821 = vmatprep.mubr.f32.mxu1 %v5761_v47  ;;  %v5764_v9 = vld [vmem:[#allocation32_spill] sm:$0xff] }
 0x130   : > { %v662_v26 = vmul.f32 %v2976_v61, %v655_v4  ;;  %v661_v49 = vmul.f32 %v2976_v61, %v653_v8  ;;  %3724 = vmatprep.subr.bf16.mxu1 %v4478_v24  ;;  %v5763_v24 = vld [vmem:[#allocation25_spill] sm:$0xff]  ;;  %v762_v16 = vmul.f32 %v2984_v34, %v5764_v9  ;;  %v2985_v47 = vld [vmem:[#allocation3 + $0x17] ss:$0 sm:$0xff] }
 0x131   : > { %v698_v7 = vmul.f32 %v2979_v40, %v5763_v24  ;;  %v4150_v24 = vmov 0.0  }
 0x132   : > { %1825 = vmatmul.mubr.f32.gmra.mrb[14].mxu1 %v1317_v33  ;;  %v664_v44 = vadd.f32 %v662_v26, %v651_v46  ;;  %v663_v20 = vadd.f32 %v661_v49, %v650_v48  ;;  %817 = vst [vmem:[#allocation2] sm:$0xf] %v4150_v24  ;;  %820 = vst [vmem:[#allocation2 + $0x14] sm:$0xf] %v4150_v24  ;;  %3416 = vmatprep.mubr.msk.f32.mxu0 %vm4154_vm1, %v4150_v24 }
 0x133   : > { %v670_v28 = vpop.permute.xlu1 %669  ;;  %v668_v31 = vpop.permute.xlu0 %667  ;;  %3726 = vmatpush3.bf16.msra.mxu1 %v4484_v25  ;;  %2102 = vmatprep.mubr.f32.mxu1 %v4610_v45 }
 0x134   : > { %v677_v12 = vmul.f32 %v2977_v38, %v670_v28  ;;  %v676_v10 = vmul.f32 %v2977_v38, %v668_v31  ;;  %3728 = vmatprep.subr.bf16.mxu1 %v5746_v57  ;;  %v5765_v38 = vld [vmem:[#allocation33_spill] sm:$0xff] }
 0x136   : > { %v679_v54 = vadd.f32 %v677_v12, %v664_v44  ;;  %v678_v0 = vadd.f32 %v676_v10, %v663_v20 }
 0x137   : > { %v683_v13 = vpop.permute.xlu1 %682  ;;  %v681_v30 = vpop.permute.xlu0 %680  ;;  %3730 = vmatpush3.bf16.msra.mxu1 %v5747_v39 }
 0x138   : > { %v690_v3 = vmul.f32 %v2978_v6, %v683_v13  ;;  %v689_v27 = vmul.f32 %v2978_v6, %v681_v30  ;;  %3732 = vmatprep.subr.bf16.mxu1 %v5748_v21  ;;  %v2986_v6 = vld [vmem:[#allocation3 + $0x18] ss:$0 sm:$0xff] }
 0x13a   : > { %v692_v52 = vadd.f32 %v690_v3, %v679_v54  ;;  %v691_v33 = vadd.f32 %v689_v27, %v678_v0 }
 0x13b   : > { %v705_v29 = vpop.permute.xlu1 %704  ;;  %v703_v25 = vpop.permute.xlu0 %702  ;;  %3734 = vmatpush3.bf16.msra.mxu1 %v5749_v17 }
 0x13c   : > { %v701_v45 = vadd.f32 %v699_v1, %v692_v52  ;;  %v700_v36 = vadd.f32 %v698_v7, %v691_v33  ;;  %3736 = vmatprep.subr.bf16.mxu1 %v5750_v5  ;;  %v712_v60 = vmul.f32 %v2980_v37, %v705_v29  ;;  %v711_v41 = vmul.f32 %v2980_v37, %v703_v25 }
 0x13e   : > { %v714_v21 = vadd.f32 %v712_v60, %v701_v45  ;;  %v713_v62 = vadd.f32 %v711_v41, %v700_v36 }
 0x13f   : > { %v718_v32 = vpop.permute.xlu1 %717  ;;  %v716_v57 = vpop.permute.xlu0 %715  ;;  %3738 = vmatpush3.bf16.msra.mxu1 %v5751_v23  ;;  %v761_v23 = vmul.f32 %v2984_v34, %v5765_v38 }
 0x140   : > { %v725_v22 = vmul.f32 %v2981_v58, %v718_v32  ;;  %v724_v59 = vmul.f32 %v2981_v58, %v716_v57  ;;  %3740 = vmatprep.subr.bf16.mxu1 %v5752_v18 }
 0x142   : > { %v727_v61 = vadd.f32 %v725_v22, %v714_v21  ;;  %v726_v4 = vadd.f32 %v724_v59, %v713_v62  ;;  %v1197_v62 = vld [vmem:[%s5602_s9 + $0x8] sm:$0xff] }
 0x143   : > { %v733_v39 = vpop.permute.xlu1 %732  ;;  %v731_v56 = vpop.permute.xlu0 %730  ;;  %3742 = vmatpush3.bf16.msra.mxu1 %v5753_v55 }
 0x144   : > { %v740_v53 = vmul.f32 %v2982_v42, %v733_v39  ;;  %v739_v17 = vmul.f32 %v2982_v42, %v731_v56  ;;  %3744 = vmatprep.subr.bf16.mxu1 %v5756_v15  ;;  %v1196_v56 = vld [vmem:[%s5602_s9] sm:$0xff] }
 0x146   : > { %v742_v11 = vadd.f32 %v740_v53, %v727_v61  ;;  %v741_v18 = vadd.f32 %v739_v17, %v726_v4 }
 0x147   : > { %v746_v5 = vpop.permute.xlu1 %745  ;;  %v744_v8 = vpop.permute.xlu0 %743  ;;  %3746 = vmatpush3.bf16.msra.mxu1 %v5757_v43  ;;  %v2987_v43 = vld [vmem:[%s5596_s3] ss:$0 sm:$0xff] }
 0x148   : > { %v753_v26 = vmul.f32 %v2983_v35, %v746_v5  ;;  %v752_v49 = vmul.f32 %v2983_v35, %v744_v8  ;;  %3748 = vmatprep.subr.bf16.mxu1 %v5758_v63 }
 0x14a   : > { %v755_v28 = vadd.f32 %v753_v26, %v742_v11  ;;  %v754_v31 = vadd.f32 %v752_v49, %v741_v18 }
 0x14b   : > { %v768_v46 = vpop.permute.xlu1 %767  ;;  %v766_v48 = vpop.permute.xlu0 %765  ;;  %3750 = vmatpush3.bf16.msra.mxu1 %v5759_v14 }
 0x14c   : > { %v764_v55 = vadd.f32 %v762_v16, %v755_v28  ;;  %v775_v12 = vmul.f32 %v2985_v47, %v768_v46  ;;  %v763_v10 = vadd.f32 %v761_v23, %v754_v31  ;;  %v774_v40 = vmul.f32 %v2985_v47, %v766_v48 }
 0x14e   : > { %v777_v20 = vadd.f32 %v775_v12, %v764_v55  ;;  %v776_v13 = vadd.f32 %v774_v40, %v763_v10  ;;  %2104 = vmatmul.mubr.f32.vlgmr.msra.gmra.mrb[16].mxu1 %v4612_v50  ;;  %v810_v50 = vlaneseq }
 0x14f   : > { %v781_v15 = vpop.permute.xlu1 %780  ;;  %v779_v44 = vpop.permute.xlu0 %778  ;;  %2109 = vmatprep.mubr.f32.mxu1 %v4804_v51 }
 0x150   : > { %v788_v30 = vmul.f32 %v2986_v6, %v781_v15  ;;  %v787_v19 = vmul.f32 %v2986_v6, %v779_v44  ;;  %v5007_v3 = vshrl.u32 %v810_v50, 7 }
 0x152   : > { %v790_v63 = vadd.f32 %v788_v30, %v777_v20  ;;  %v789_v1 = vadd.f32 %v787_v19, %v776_v13  ;;  %2111 = vmatmul.mubr.f32.gmra.mrb[18].mxu1 %v4818_v2  ;;  %vm812_vm0 = vcmp.lt.s32.totalorder %v5007_v3, 7  ;;  %vm1155_vm2 = vcmp.lt.s32.totalorder %v5007_v3, 6 }
 0x153   : > { %3381 = vmatprep.mubr.msk.f32.mxu1 %vm4154_vm1, %v4150_v24 }
 0x154   : > { %v799_v14 = vadd.f32 %v2987_v43, %v790_v63  ;;  %v798_v7 = vadd.f32 %v2987_v43, %v789_v1  ;;  %v5108_v43 = vld [vmem:[#allocation10] sm:$0xff]  ;;  %v5110_v63 = vld [vmem:[#allocation10 + $0x8] sm:$0xff] }
 0x156   : > { %v801_v54 = vmax.f32 %v799_v14, 0.0  ;;  %v800_v0 = vmax.f32 %v798_v7, 0.0  ;;  %v2160_v14 = vand.u32 4294901760, %v5108_v43  ;;  %v2163_v7 = vand.u32 4294901760, %v5110_v63 }
 0x158   : > { %804 = vrot.lane.b32.xlu1 %v801_v54, %s4148_s13  ;;  %802 = vrot.lane.b32.xlu0 %v800_v0, %s4148_s13 }
 0x19d   : > { %v3051_v22 = vpop.f32.mrb[0].mxu1 }
 0x19e   : > { %v3052_v59 = vpop.f32.mrb[1].mxu1 }
 0x19f   : > { %v3053_v39 = vadd.f32 %v3052_v59, %v3051_v22 }
 0x1a1   : > { %v1307_v17 = vadd.f32 %v3053_v39, %v1196_v56 }
 0x1bb   : > { %v3054_v21 = vpop.f32.mrb[2].mxu1 }
 0x1bc   : > { %v3055_v53 = vpop.f32.mrb[3].mxu1 }
 0x1bd   : > { %v3056_v34 = vadd.f32 %v3055_v53, %v3054_v21 }
 0x1bf   : > { %v1322_v4 = vadd.f32 %v3056_v34, %v1197_v62 }
 0x1c1   : > { %v3089_v35 = vpop.f32.mrb[4].mxu1 }
 0x1c2   : > { %v3090_v61 = vpop.f32.mrb[5].mxu1 }
 0x1c3   : > { %v3091_v5 = vadd.f32 %v3090_v61, %v3089_v35 }
 0x1c5   : > { %v3092_v8 = vpop.f32.mrb[6].mxu1  ;;  %v1554_v38 = vadd.f32 %v3091_v5, %v1307_v17 }
 0x1c6   : > { %v3093_v9 = vpop.f32.mrb[7].mxu1 }
 0x1c7   : > { %v3094_v23 = vadd.f32 %v3093_v9, %v3092_v8  ;;  %v2989_v8 = vld [vmem:[%s5597_s4 + $0x1] ss:$0 sm:$0xff]  ;;  %v2988_v9 = vld [vmem:[%s5597_s4] ss:$0 sm:$0xff] }
 0x1c9   : > { %v1561_v26 = vadd.f32 %v3094_v23, %v1322_v4 }
 0x1ca   : > { %v805_v27 = vpop.permute.xlu1 %804  ;;  %v803_v52 = vpop.permute.xlu0 %802 }
 0x1cb   : > { %v807_v33 = vmax.f32 %v801_v54, %v805_v27  ;;  %v806_v29 = vmax.f32 %v800_v0, %v803_v52  ;;  %v4153_v27 = vmov 0.0|0.0  }
 0x1cc   : > { %3775 = vmatprep.subr.bf16.mxu0 %v4153_v27  ;;  %3751 = vmatprep.subr.bf16.mxu1 %v4153_v27 }
 0x1cd   : > { %v809_v51 = vrot.slane %v807_v33, 1  ;;  %v808_v25 = vrot.slane %v806_v29, 1 }
 0x1cf   : > { %v813_v45 = vsel %vm812_vm0, %v808_v25, %v809_v51  ;;  %v814_v36 = vsel %vm812_vm0, %v809_v51, %v808_v25 }
 0x1d0   : > { %v5010_v2 = vmax.f32 %v806_v29, %v813_v45  ;;  %v5012_v37 = vmax.f32 %v807_v33, %v814_v36  ;;  %v5123_v33 = vsub.f32 %v5108_v43, %v2160_v14  ;;  %v5128_v29 = vsub.f32 %v5110_v63, %v2163_v7 }
 0x1d2   : > { %818 = vst [vmem:[#allocation2 + $0x4] sm:$0xff] %v5010_v2  ;;  %819 = vst [vmem:[#allocation2 + $0xc] sm:$0xff] %v5012_v37  ;;  %v2253_v36 = vand.u32 4294901760, %v5123_v33  ;;  %v2260_v22 = vand.u32 4294901760, %v5128_v29 }
 0x1d4   : > { %v2254_v56 = vsub.f32 %v5123_v33, %v2253_v36  ;;  %v2261_v21 = vsub.f32 %v5128_v29, %v2260_v22 }
 0x1d6   : > { %v2255_v17 = vand.u32 4294901760, %v2254_v56  ;;  %v2262_v34 = vand.u32 4294901760, %v2261_v21 }
 0x1d8   : > { %v3776_v61 = vpack.c.bf16 %v2262_v34, %v2255_v17 }
 0x1d9   : > { %v5016_v58 = vld [vmem:[#allocation2 + $0x8] sm:$0xff]  ;;  %v5018_v32 = vld [vmem:[#allocation2] sm:$0xff]  ;;  %v5098_v16 = vld [vmem:[#allocation2 + $0x10] sm:$0xff] }
 0x1da   : > { %825 = vrot.lane.b32.xlu1 %v5016_v58, %s4151_s28  ;;  %823 = vrot.lane.b32.xlu0 %v5018_v32, %s4151_s28  ;;  %v5036_v57 = vld [vmem:[#allocation2 + $0xa] sm:$0xff]  ;;  %v5038_v60 = vld [vmem:[#allocation2 + $0x2] sm:$0xff] }
 0x1db   : > { %v5072_v41 = vld [vmem:[#allocation2 + $0xe] sm:$0xff]  ;;  %v5074_v42 = vld [vmem:[#allocation2 + $0x6] sm:$0xff]  ;;  %3777 = vmatpush3.bf16.msra.mxu0 %v3776_v61 }
 0x1dc   : > { %v3203_v28 = vpop.f32.mrb[0].mxu0  ;;  %3778 = vmatprep.subr.bf16.mxu0 %v4153_v27 }
 0x1dd   : > { %v3204_v46 = vpop.f32.mrb[1].mxu0 }
 0x1de   : > { %838 = vrot.lane.b32.xlu1 %v5016_v58, %s4147_s12  ;;  %836 = vrot.lane.b32.xlu0 %v5018_v32, %s4147_s12  ;;  %v3205_v10 = vadd.f32 %v3204_v46, %v3203_v28 }
 0x1e0   : > { %v3206_v19 = vpop.f32.mrb[2].mxu0 }
 0x1e1   : > { %v3127_v11 = vpop.f32.mrb[8].mxu1  ;;  %v3207_v1 = vpop.f32.mrb[3].mxu0 }
 0x1e2   : > { %860 = vrot.lane.b32.xlu1 %v5016_v58, %s4149_s14  ;;  %858 = vrot.lane.b32.xlu0 %v5018_v32, %s4149_s14  ;;  %v3128_v18 = vpop.f32.mrb[9].mxu1  ;;  %v3208_v50 = vadd.f32 %v3207_v1, %v3206_v19 }
 0x1e3   : > { %v3129_v49 = vadd.f32 %v3128_v18, %v3127_v11 }
 0x1e5   : > { %v3130_v47 = vpop.f32.mrb[10].mxu1  ;;  %v1699_v48 = vadd.f32 %v3129_v49, %v1554_v38  ;;  %v2990_v49 = vld [vmem:[%s5597_s4 + $0x2] ss:$0 sm:$0xff] }
 0x1e6   : > { %873 = vrot.lane.b32.xlu1 %v5016_v58, %s4152_s29  ;;  %871 = vrot.lane.b32.xlu0 %v5018_v32, %s4152_s29  ;;  %v3131_v31 = vpop.f32.mrb[11].mxu1 }
 0x1e7   : > { %v3132_v55 = vadd.f32 %v3131_v31, %v3130_v47 }
 0x1e9   : > { %v1708_v6 = vadd.f32 %v3132_v55, %v1561_v26 }
 0x1ea   : > { %888 = vrot.lane.b32.xlu1 %v5036_v57, %s4151_s28  ;;  %886 = vrot.lane.b32.xlu0 %v5038_v60, %s4151_s28 }
 0x1ee   : > { %901 = vrot.lane.b32.xlu1 %v5036_v57, %s4147_s12  ;;  %899 = vrot.lane.b32.xlu0 %v5038_v60, %s4147_s12 }
 0x1f2   : > { %923 = vrot.lane.b32.xlu1 %v5036_v57, %s4149_s14  ;;  %921 = vrot.lane.b32.xlu0 %v5038_v60, %s4149_s14 }
 0x1f6   : > { %936 = vrot.lane.b32.xlu1 %v5036_v57, %s4152_s29  ;;  %934 = vrot.lane.b32.xlu0 %v5038_v60, %s4152_s29 }
 0x1fa   : > { %951 = vrot.lane.b32.xlu1 %v5012_v37, %s4151_s28  ;;  %949 = vrot.lane.b32.xlu0 %v5010_v2, %s4151_s28 }
 0x1fe   : > { %964 = vrot.lane.b32.xlu1 %v5012_v37, %s4147_s12  ;;  %962 = vrot.lane.b32.xlu0 %v5010_v2, %s4147_s12 }
 0x201   : > { %v3165_v12 = vpop.f32.mrb[12].mxu1 }
 0x202   : > { %986 = vrot.lane.b32.xlu1 %v5012_v37, %s4149_s14  ;;  %984 = vrot.lane.b32.xlu0 %v5010_v2, %s4149_s14  ;;  %v3166_v40 = vpop.f32.mrb[13].mxu1 }
 0x203   : > { %v3167_v15 = vadd.f32 %v3166_v40, %v3165_v12  ;;  %v854_v12 = vmul.f32 %v2990_v49, %v5018_v32 }
 0x205   : > { %v3168_v44 = vpop.f32.mrb[14].mxu1  ;;  %v1816_v13 = vadd.f32 %v3167_v15, %v1699_v48  ;;  %v2991_v48 = vld [vmem:[%s5597_s4 + $0x3] ss:$0 sm:$0xff]  ;;  %v855_v15 = vmul.f32 %v2990_v49, %v5016_v58  ;;  %v2997_v49 = vld [vmem:[%s5597_s4 + $0x9] ss:$0 sm:$0xff] }
 0x206   : > { %999 = vrot.lane.b32.xlu1 %v5012_v37, %s4152_s29  ;;  %997 = vrot.lane.b32.xlu0 %v5010_v2, %s4152_s29  ;;  %v3169_v20 = vpop.f32.mrb[15].mxu1 }
 0x207   : > { %v3170_v30 = vadd.f32 %v3169_v20, %v3168_v44  ;;  %v1995_v0 = vadd.f32 %v3205_v10, %v1816_v13  ;;  %v2992_v10 = vld [vmem:[%s5597_s4 + $0x4] ss:$0 sm:$0xff]  ;;  %v2993_v13 = vld [vmem:[%s5597_s4 + $0x5] ss:$0 sm:$0xff] }
 0x209   : > { %v1827_v54 = vadd.f32 %v3170_v30, %v1708_v6 }
 0x20a   : > { %1014 = vrot.lane.b32.xlu1 %v5072_v41, %s4151_s28  ;;  %1012 = vrot.lane.b32.xlu0 %v5074_v42, %s4151_s28 }
 0x20b   : > { %v2002_v25 = vadd.f32 %v3208_v50, %v1827_v54 }
 0x20e   : > { %1027 = vrot.lane.b32.xlu1 %v5072_v41, %s4147_s12  ;;  %1025 = vrot.lane.b32.xlu0 %v5074_v42, %s4147_s12 }
 0x212   : > { %1049 = vrot.lane.b32.xlu1 %v5072_v41, %s4149_s14  ;;  %1047 = vrot.lane.b32.xlu0 %v5074_v42, %s4149_s14 }
 0x216   : > { %1062 = vrot.lane.b32.xlu1 %v5072_v41, %s4152_s29  ;;  %1060 = vrot.lane.b32.xlu0 %v5074_v42, %s4152_s29 }
 0x21a   : > { %1077 = vrot.lane.b32.xlu1 %v5098_v16, %s4151_s28  ;;  %1075 = vrot.lane.b32.xlu0 %v5016_v58, %s4151_s28 }
 0x21e   : > { %1090 = vrot.lane.b32.xlu1 %v5098_v16, %s4147_s12  ;;  %1088 = vrot.lane.b32.xlu0 %v5016_v58, %s4147_s12 }
 0x221   : > { %v3241_v52 = vpop.f32.mrb[16].mxu1 }
 0x222   : > { %1112 = vrot.lane.b32.xlu1 %v5098_v16, %s4149_s14  ;;  %1110 = vrot.lane.b32.xlu0 %v5016_v58, %s4149_s14  ;;  %v3242_v51 = vpop.f32.mrb[17].mxu1 }
 0x223   : > { %v3243_v45 = vadd.f32 %v3242_v51, %v3241_v52  ;;  %v2994_v51 = vld [vmem:[%s5597_s4 + $0x6] ss:$0 sm:$0xff] }
 0x225   : > { %v5136_v59 = vadd.f32 %v3243_v45, %v1995_v0  ;;  %v3244_v39 = vpop.f32.mrb[18].mxu1 }
 0x226   : > { %1125 = vrot.lane.b32.xlu1 %v5098_v16, %s4152_s29  ;;  %1123 = vrot.lane.b32.xlu0 %v5016_v58, %s4152_s29  ;;  %v3245_v62 = vpop.f32.mrb[19].mxu1 }
 0x227   : > { %v3246_v53 = vadd.f32 %v3245_v62, %v3244_v39  ;;  %v2995_v62 = vld [vmem:[%s5597_s4 + $0x7] ss:$0 sm:$0xff] }
 0x229   : > { %v5144_v35 = vadd.f32 %v3246_v53, %v2002_v25 }
 0x24c   : > { %v826_v4 = vpop.permute.xlu1 %825  ;;  %v824_v5 = vpop.permute.xlu0 %823 }
 0x24d   : > { %v832_v18 = vmul.f32 %v2988_v9, %v824_v5  ;;  %v833_v31 = vmul.f32 %v2988_v9, %v826_v4 }
 0x250   : > { %v839_v38 = vpop.permute.xlu1 %838  ;;  %v837_v23 = vpop.permute.xlu0 %836 }
 0x251   : > { %v845_v11 = vmul.f32 %v2989_v8, %v837_v23  ;;  %v846_v26 = vmul.f32 %v2989_v8, %v839_v38  ;;  %v917_v8 = vmul.f32 %v2995_v62, %v5038_v60  ;;  %v2998_v60 = vld [vmem:[%s5597_s4 + $0xa] ss:$0 sm:$0xff] }
 0x253   : > { %v847_v46 = vadd.f32 %v845_v11, %v832_v18  ;;  %v848_v55 = vadd.f32 %v846_v26, %v833_v31  ;;  %v2996_v18 = vld [vmem:[%s5597_s4 + $0x8] ss:$0 sm:$0xff]  ;;  %v918_v26 = vmul.f32 %v2995_v62, %v5036_v57 }
 0x254   : > { %v861_v47 = vpop.permute.xlu1 %860  ;;  %v859_v28 = vpop.permute.xlu0 %858 }
 0x255   : > { %v856_v44 = vadd.f32 %v854_v12, %v847_v46  ;;  %v867_v20 = vmul.f32 %v2991_v48, %v859_v28  ;;  %v857_v30 = vadd.f32 %v855_v15, %v848_v55  ;;  %v868_v19 = vmul.f32 %v2991_v48, %v861_v47 }
 0x257   : > { %v869_v32 = vadd.f32 %v867_v20, %v856_v44  ;;  %v870_v25 = vadd.f32 %v868_v19, %v857_v30  ;;  %v2999_v20 = vld [vmem:[%s5597_s4 + $0xb] ss:$0 sm:$0xff] }
 0x258   : > { %v874_v40 = vpop.permute.xlu1 %873  ;;  %v872_v6 = vpop.permute.xlu0 %871 }
 0x259   : > { %v880_v1 = vmul.f32 %v2992_v10, %v872_v6  ;;  %v881_v50 = vmul.f32 %v2992_v10, %v874_v40 }
 0x25b   : > { %v882_v45 = vadd.f32 %v880_v1, %v869_v32  ;;  %v883_v53 = vadd.f32 %v881_v50, %v870_v25 }
 0x25c   : > { %v889_v54 = vpop.permute.xlu1 %888  ;;  %v887_v0 = vpop.permute.xlu0 %886 }
 0x25d   : > { %v895_v52 = vmul.f32 %v2993_v13, %v887_v0  ;;  %v896_v39 = vmul.f32 %v2993_v13, %v889_v54  ;;  %v3000_v54 = vld [vmem:[%s5597_s4 + $0xc] ss:$0 sm:$0xff] }
 0x25f   : > { %v897_v17 = vadd.f32 %v895_v52, %v882_v45  ;;  %v898_v4 = vadd.f32 %v896_v39, %v883_v53  ;;  %v981_v45 = vmul.f32 %v3000_v54, %v5012_v37  ;;  %v980_v39 = vmul.f32 %v3000_v54, %v5010_v2  ;;  %v3003_v2 = vld [vmem:[%s5597_s4 + $0xf] ss:$0 sm:$0xff]  ;;  %v3007_v54 = vld [vmem:[%s5597_s4 + $0x13] ss:$0 sm:$0xff] }
 0x260   : > { %v902_v56 = vpop.permute.xlu1 %901  ;;  %v900_v21 = vpop.permute.xlu0 %899 }
 0x261   : > { %v909_v34 = vmul.f32 %v2994_v51, %v902_v56  ;;  %v908_v61 = vmul.f32 %v2994_v51, %v900_v21 }
 0x263   : > { %v910_v5 = vadd.f32 %v908_v61, %v897_v17  ;;  %v911_v23 = vadd.f32 %v909_v34, %v898_v4  ;;  %v3001_v17 = vld [vmem:[%s5597_s4 + $0xd] ss:$0 sm:$0xff]  ;;  %v3002_v34 = vld [vmem:[%s5597_s4 + $0xe] ss:$0 sm:$0xff] }
 0x264   : > { %v924_v9 = vpop.permute.xlu1 %923  ;;  %v922_v38 = vpop.permute.xlu0 %921 }
 0x265   : > { %v919_v11 = vadd.f32 %v917_v8, %v910_v5  ;;  %v920_v31 = vadd.f32 %v918_v26, %v911_v23  ;;  %v931_v46 = vmul.f32 %v2996_v18, %v924_v9  ;;  %v930_v48 = vmul.f32 %v2996_v18, %v922_v38 }
 0x267   : > { %v933_v6 = vadd.f32 %v931_v46, %v920_v31  ;;  %v932_v15 = vadd.f32 %v930_v48, %v919_v11 }
 0x268   : > { %v937_v47 = vpop.permute.xlu1 %936  ;;  %v935_v28 = vpop.permute.xlu0 %934 }
 0x269   : > { %v944_v55 = vmul.f32 %v2997_v49, %v937_v47  ;;  %v943_v12 = vmul.f32 %v2997_v49, %v935_v28  ;;  %v3004_v47 = vld [vmem:[%s5597_s4 + $0x10] ss:$0 sm:$0xff] }
 0x26b   : > { %v946_v13 = vadd.f32 %v944_v55, %v933_v6  ;;  %v945_v30 = vadd.f32 %v943_v12, %v932_v15 }
 0x26c   : > { %v952_v10 = vpop.permute.xlu1 %951  ;;  %v950_v40 = vpop.permute.xlu0 %949 }
 0x26d   : > { %v959_v57 = vmul.f32 %v2998_v60, %v952_v10  ;;  %v958_v44 = vmul.f32 %v2998_v60, %v950_v40  ;;  %v3005_v60 = vld [vmem:[%s5597_s4 + $0x11] ss:$0 sm:$0xff] }
 0x26f   : > { %v961_v0 = vadd.f32 %v959_v57, %v946_v13  ;;  %v960_v32 = vadd.f32 %v958_v44, %v945_v30  ;;  %v1044_v57 = vmul.f32 %v3005_v60, %v5072_v41  ;;  %v1043_v44 = vmul.f32 %v3005_v60, %v5074_v42  ;;  %v3006_v30 = vld [vmem:[%s5597_s4 + $0x12] ss:$0 sm:$0xff]  ;;  %v3008_v42 = vld [vmem:[%s5597_s4 + $0x14] ss:$0 sm:$0xff] }
 0x270   : > { %v965_v19 = vpop.permute.xlu1 %964  ;;  %v963_v1 = vpop.permute.xlu0 %962 }
 0x271   : > { %v972_v50 = vmul.f32 %v2999_v20, %v965_v19  ;;  %v971_v52 = vmul.f32 %v2999_v20, %v963_v1 }
 0x273   : > { %v974_v51 = vadd.f32 %v972_v50, %v961_v0  ;;  %v973_v25 = vadd.f32 %v971_v52, %v960_v32 }
 0x274   : > { %v987_v56 = vpop.permute.xlu1 %986  ;;  %v985_v21 = vpop.permute.xlu0 %984 }
 0x275   : > { %v983_v62 = vadd.f32 %v981_v45, %v974_v51  ;;  %v982_v53 = vadd.f32 %v980_v39, %v973_v25  ;;  %v994_v5 = vmul.f32 %v3001_v17, %v987_v56  ;;  %v993_v8 = vmul.f32 %v3001_v17, %v985_v21  ;;  %v5218_v25 = vld [vmem:[#allocation10 + $0x10] sm:$0xff]  ;;  %v5220_v45 = vld [vmem:[#allocation10 + $0x18] sm:$0xff] }
 0x276   : > { %v2166_v39 = vand.u32 4294901760, %v5218_v25  ;;  %v2169_v56 = vand.u32 4294901760, %v5220_v45 }
 0x277   : > { %v996_v11 = vadd.f32 %v994_v5, %v983_v62  ;;  %v995_v18 = vadd.f32 %v993_v8, %v982_v53 }
 0x278   : > { %v1000_v61 = vpop.permute.xlu1 %999  ;;  %v998_v4 = vpop.permute.xlu0 %997  ;;  %v5232_v5 = vsub.f32 %v5220_v45, %v2169_v56 }
 0x279   : > { %v1007_v37 = vmul.f32 %v3002_v34, %v1000_v61  ;;  %v1006_v9 = vmul.f32 %v3002_v34, %v998_v4  ;;  %v5227_v4 = vsub.f32 %v5218_v25, %v2166_v39  ;;  %v5364_v25 = vld [vmem:[#allocation10 + $0x68] sm:$0xff] }
 0x27b   : > { %v1009_v28 = vadd.f32 %v1007_v37, %v996_v11  ;;  %v1008_v31 = vadd.f32 %v1006_v9, %v995_v18  ;;  %v3009_v37 = vld [vmem:[%s5597_s4 + $0x15] ss:$0 sm:$0xff]  ;;  %v5237_v9 = vld [vmem:[#allocation10 + $0x20] sm:$0xff]  ;;  %v2267_v11 = vand.u32 4294901760, %v5227_v4  ;;  %v2274_v18 = vand.u32 4294901760, %v5232_v5 }
 0x27c   : > { %v1015_v38 = vpop.permute.xlu1 %1014  ;;  %v1013_v23 = vpop.permute.xlu0 %1012 }
 0x27d   : > { %v1022_v26 = vmul.f32 %v3003_v2, %v1015_v38  ;;  %v1021_v49 = vmul.f32 %v3003_v2, %v1013_v23  ;;  %v5239_v38 = vld [vmem:[#allocation10 + $0x28] sm:$0xff]  ;;  %v3010_v23 = vld [vmem:[%s5597_s4 + $0x16] ss:$0 sm:$0xff] }
 0x27f   : > { %v1024_v55 = vadd.f32 %v1022_v26, %v1009_v28  ;;  %v1023_v12 = vadd.f32 %v1021_v49, %v1008_v31  ;;  %v2172_v31 = vand.u32 4294901760, %v5237_v9 }
 0x280   : > { %v1028_v46 = vpop.permute.xlu1 %1027  ;;  %v1026_v48 = vpop.permute.xlu0 %1025 }
 0x281   : > { %v1035_v10 = vmul.f32 %v3004_v47, %v1028_v46  ;;  %v1034_v40 = vmul.f32 %v3004_v47, %v1026_v48  ;;  %v2175_v46 = vand.u32 4294901760, %v5239_v38 }
 0x283   : > { %v1037_v6 = vadd.f32 %v1035_v10, %v1024_v55  ;;  %v1036_v15 = vadd.f32 %v1034_v40, %v1023_v12  ;;  %v2268_v55 = vsub.f32 %v5227_v4, %v2267_v11  ;;  %v2275_v12 = vsub.f32 %v5232_v5, %v2274_v18  ;;  %v3011_v40 = vld [vmem:[%s5597_s4 + $0x17] ss:$0 sm:$0xff] }
 0x284   : > { %v1050_v20 = vpop.permute.xlu1 %1049  ;;  %v1048_v13 = vpop.permute.xlu0 %1047  ;;  %v1107_v10 = vmul.f32 %v3010_v23, %v5098_v16 }
 0x285   : > { %v1046_v19 = vadd.f32 %v1044_v57, %v1037_v6  ;;  %v1045_v1 = vadd.f32 %v1043_v44, %v1036_v15  ;;  %v1057_v0 = vmul.f32 %v3006_v30, %v1050_v20  ;;  %v1056_v32 = vmul.f32 %v3006_v30, %v1048_v13  ;;  %v5269_v44 = vld [vmem:[#allocation10 + $0x30] sm:$0xff]  ;;  %v5271_v20 = vld [vmem:[#allocation10 + $0x38] sm:$0xff] }
 0x286   : > { %v1106_v6 = vmul.f32 %v3010_v23, %v5016_v58  ;;  %v5262_v15 = vsub.f32 %v5237_v9, %v2172_v31  ;;  %v5267_v57 = vsub.f32 %v5239_v38, %v2175_v46  ;;  %v2269_v30 = vand.u32 4294901760, %v2268_v55  ;;  %v5298_v23 = vld [vmem:[#allocation10 + $0x48] sm:$0xff] }
 0x287   : > { %v1059_v21 = vadd.f32 %v1057_v0, %v1046_v19  ;;  %v1058_v62 = vadd.f32 %v1056_v32, %v1045_v1  ;;  %v2276_v19 = vand.u32 4294901760, %v2275_v12  ;;  %v2178_v32 = vand.u32 4294901760, %v5269_v44 }
 0x288   : > { %v1063_v50 = vpop.permute.xlu1 %1062  ;;  %v1061_v52 = vpop.permute.xlu0 %1060  ;;  %v5675_v0 = vand.u32 4294901760, %v5267_v57 }
 0x289   : > { %v1070_v51 = vmul.f32 %v3007_v54, %v1063_v50  ;;  %v1069_v41 = vmul.f32 %v3007_v54, %v1061_v52  ;;  %v2281_v54 = vand.u32 4294901760, %v5262_v15  ;;  %v2181_v50 = vand.u32 4294901760, %v5271_v20 }
 0x28b   : > { %v1072_v8 = vadd.f32 %v1070_v51, %v1059_v21  ;;  %v1071_v2 = vadd.f32 %v1069_v41, %v1058_v62  ;;  %v3012_v21 = vld [vmem:[%s5597_s4 + $0x18] ss:$0 sm:$0xff]  ;;  %v3779_v62 = vpack.c.bf16 %v2276_v19, %v2269_v30 }
 0x28c   : > { %v1078_v53 = vpop.permute.xlu1 %1077  ;;  %v1076_v17 = vpop.permute.xlu0 %1075 }
 0x28d   : > { %v1085_v34 = vmul.f32 %v3008_v42, %v1078_v53  ;;  %v1084_v61 = vmul.f32 %v3008_v42, %v1076_v17  ;;  %v2282_v53 = vsub.f32 %v5262_v15, %v2281_v54  ;;  %v2289_v17 = vsub.f32 %v5267_v57, %v5675_v0  ;;  %3780 = vmatpush3.bf16.msra.mxu0 %v3779_v62 }
 0x28e   : > { %3781 = vmatprep.subr.bf16.mxu0 %v4153_v27 }
 0x28f   : > { %v1087_v26 = vadd.f32 %v1085_v34, %v1072_v8  ;;  %v1086_v49 = vadd.f32 %v1084_v61, %v1071_v2  ;;  %v5286_v34 = vld [vmem:[#allocation10 + $0x40] sm:$0xff]  ;;  %v5291_v2 = vsub.f32 %v5269_v44, %v2178_v32 }
 0x290   : > { %v1091_v47 = vpop.permute.xlu1 %1090  ;;  %v1089_v28 = vpop.permute.xlu0 %1088 }
 0x291   : > { %v1098_v48 = vmul.f32 %v3009_v37, %v1091_v47  ;;  %v1097_v60 = vmul.f32 %v3009_v37, %v1089_v28  ;;  %v5296_v37 = vsub.f32 %v5271_v20, %v2181_v50  ;;  %v2283_v47 = vand.u32 4294901760, %v2282_v53 }
 0x292   : > { %v2290_v28 = vand.u32 4294901760, %v2289_v17 }
 0x293   : > { %v1100_v16 = vadd.f32 %v1098_v48, %v1087_v26  ;;  %v1099_v13 = vadd.f32 %v1097_v60, %v1086_v49  ;;  %v2184_v48 = vand.u32 4294901760, %v5286_v34  ;;  %v2187_v60 = vand.u32 4294901760, %v5298_v23 }
 0x294   : > { %v1113_v1 = vpop.permute.xlu1 %1112  ;;  %v1111_v58 = vpop.permute.xlu0 %1110 }
 0x295   : > { %v1109_v52 = vadd.f32 %v1107_v10, %v1100_v16  ;;  %v1120_v51 = vmul.f32 %v3011_v40, %v1113_v1  ;;  %v1108_v41 = vadd.f32 %v1106_v6, %v1099_v13  ;;  %v1119_v42 = vmul.f32 %v3011_v40, %v1111_v58  ;;  %v3013_v6 = vld [vmem:[%s5598_s5] ss:$0 sm:$0xff]  ;;  %v5324_v1 = vld [vmem:[#allocation10 + $0x50] sm:$0xff]  ;;  %v5326_v58 = vld [vmem:[#allocation10 + $0x58] sm:$0xff] }
 0x296   : > { %v5674_v10 = vand.u32 4294901760, %v5291_v2  ;;  %v5673_v40 = vand.u32 4294901760, %v5296_v37  ;;  %v3782_v16 = vpack.c.bf16 %v2290_v28, %v2283_v47  ;;  %v5312_v13 = vpack.c.bf16 %v2163_v7, %v2160_v14  ;;  %v5362_v47 = vld [vmem:[#allocation10 + $0x60] sm:$0xff] }
 0x297   : > { %v1122_v61 = vadd.f32 %v1120_v51, %v1109_v52  ;;  %v1121_v8 = vadd.f32 %v1119_v42, %v1108_v41  ;;  %v5317_v30 = vsub.f32 %v5286_v34, %v2184_v48  ;;  %v5322_v19 = vsub.f32 %v5298_v23, %v2187_v60 }
 0x298   : > { %v1126_v26 = vpop.permute.xlu1 %1125  ;;  %v1124_v49 = vpop.permute.xlu0 %1123  ;;  %v2296_v63 = vsub.f32 %v5291_v2, %v5674_v10  ;;  %v2303_v14 = vsub.f32 %v5296_v37, %v5673_v40  ;;  %3783 = vmatpush3.bf16.msra.mxu0 %v3782_v16  ;;  %3753 = vmatpush3.bf16.msra.mxu1 %v5312_v13  ;;  %v2190_v41 = vand.u32 4294901760, %v5324_v1  ;;  %v2193_v42 = vand.u32 4294901760, %v5326_v58 }
 0x299   : > { %v1133_v55 = vmul.f32 %v3012_v21, %v1126_v26  ;;  %v1132_v12 = vmul.f32 %v3012_v21, %v1124_v49  ;;  %v5672_v7 = vand.u32 4294901760, %v5317_v30  ;;  %v5666_v51 = vand.u32 4294901760, %v5322_v19  ;;  %3784 = vmatprep.subr.bf16.mxu0 %v4153_v27  ;;  %3754 = vmatprep.subr.bf16.mxu1 %v4153_v27 }
 0x29a   : > { %v2297_v53 = vand.u32 4294901760, %v2296_v63  ;;  %v2304_v17 = vand.u32 4294901760, %v2303_v14  ;;  %v5360_v49 = vsub.f32 %v5324_v1, %v2190_v41  ;;  %v5371_v28 = vsub.f32 %v5326_v58, %v2193_v42 }
 0x29b   : > { %v1135_v52 = vadd.f32 %v1133_v55, %v1122_v61  ;;  %v1134_v43 = vadd.f32 %v1132_v12, %v1121_v8  ;;  %v5349_v61 = vpack.c.bf16 %v2169_v56, %v2166_v39  ;;  %v2310_v8 = vsub.f32 %v5317_v30, %v5672_v7 }
 0x29c   : > { %v2317_v26 = vsub.f32 %v5322_v19, %v5666_v51  ;;  %v3785_v56 = vpack.c.bf16 %v2304_v17, %v2297_v53  ;;  %v2196_v16 = vand.u32 4294901760, %v5362_v47  ;;  %v5389_v14 = vpack.c.bf16 %v2175_v46, %v2172_v31  ;;  %v2157_v17 = vld [vmem:[#allocation10 + $0x70] sm:$0xff] }
 0x29d   : > { %v5339_v21 = vadd.f32 %v3013_v6, %v1135_v52  ;;  %v5341_v62 = vadd.f32 %v3013_v6, %v1134_v43  ;;  %3756 = vmatpush3.bf16.msra.mxu1 %v5349_v61  ;;  %v2311_v55 = vand.u32 4294901760, %v2310_v8  ;;  %v5665_v6 = vand.u32 4294901760, %v5360_v49  ;;  %v2158_v8 = vld [vmem:[#allocation10 + $0x78] sm:$0xff] }
 0x29e   : > { %v2318_v12 = vand.u32 4294901760, %v2317_v26  ;;  %v5671_v52 = vand.u32 4294901760, %v5371_v28  ;;  %v2199_v43 = vand.u32 4294901760, %v5364_v25  ;;  %3786 = vmatpush3.bf16.msra.mxu0 %v3785_v56  ;;  %3757 = vmatprep.subr.bf16.mxu1 %v4153_v27  ;;  %v5399_v56 = vsub.f32 %v5362_v47, %v2196_v16 }
 0x29f   : > { %v1146_v45 = vmax.f32 %v5339_v21, 0.0  ;;  %v1145_v39 = vmax.f32 %v5341_v62, 0.0  ;;  %v2324_v53 = vsub.f32 %v5360_v49, %v5665_v6  ;;  %3787 = vmatprep.subr.bf16.mxu0 %v4153_v27  ;;  %v2202_v38 = vand.u32 4294901760, %v2157_v17 }
 0x2a0   : > { %v3788_v63 = vpack.c.bf16 %v2318_v12, %v2311_v55  ;;  %v2331_v26 = vsub.f32 %v5371_v28, %v5671_v52  ;;  %v5402_v9 = vsub.f32 %v5364_v25, %v2199_v43  ;;  %v2205_v46 = vand.u32 4294901760, %v2158_v8 }
 0x2a1   : > { %1149 = vrot.lane.b32.xlu1 %v1146_v45, %s4149_s14  ;;  %1147 = vrot.lane.b32.xlu0 %v1145_v39, %s4149_s14  ;;  %v2325_v31 = vand.u32 4294901760, %v2324_v53  ;;  %v5670_v12 = vand.u32 4294901760, %v5399_v56  ;;  %v5408_v51 = vsub.f32 %v2157_v17, %v2202_v38  ;;  %v5414_v47 = vpack.c.bf16 %v2181_v50, %v2178_v32 }
 0x2a2   : > { %3759 = vmatpush3.bf16.msra.mxu1 %v5389_v14  ;;  %v2332_v55 = vand.u32 4294901760, %v2331_v26  ;;  %v5669_v6 = vand.u32 4294901760, %v5402_v9  ;;  %3789 = vmatpush3.bf16.msra.mxu0 %v3788_v63  ;;  %v5416_v25 = vsub.f32 %v2158_v8, %v2205_v46  ;;  %v5433_v50 = vpack.c.bf16 %v2187_v60, %v2184_v48 }
 0x2a3   : > { %3760 = vmatprep.subr.bf16.mxu1 %v4153_v27  ;;  %3790 = vmatprep.subr.bf16.mxu0 %v4153_v27  ;;  %v2338_v26 = vsub.f32 %v5399_v56, %v5670_v12  ;;  %v5668_v63 = vand.u32 4294901760, %v5408_v51  ;;  %v5449_v23 = vpack.c.bf16 %v2193_v42, %v2190_v41  ;;  %v5457_v60 = vpack.c.bf16 %v2199_v43, %v2196_v16 }
 0x2a4   : > { %v3791_v53 = vpack.c.bf16 %v2332_v55, %v2325_v31  ;;  %v2345_v17 = vsub.f32 %v5402_v9, %v5669_v6  ;;  %v5667_v44 = vand.u32 4294901760, %v5416_v25  ;;  %v3803_v1 = vpack.c.bf16 %v5232_v5, %v5227_v4 }
 0x2a5   : > { %v2339_v20 = vand.u32 4294901760, %v2338_v26  ;;  %v2352_v8 = vsub.f32 %v5408_v51, %v5668_v63  ;;  %v5464_v58 = vpack.c.bf16 %v2205_v46, %v2202_v38  ;;  %v3806_v41 = vpack.c.bf16 %v5267_v57, %v5262_v15  ;;  %v3015_v63 = vld [vmem:[#allocation7] ss:$0 sm:$0xff] }
 0x2a6   : > { %3762 = vmatpush3.bf16.msra.mxu1 %v5414_v47  ;;  %v2346_v32 = vand.u32 4294901760, %v2345_v17  ;;  %3792 = vmatpush3.bf16.msra.mxu0 %v3791_v53  ;;  %v2359_v31 = vsub.f32 %v5416_v25, %v5667_v44  ;;  %v3809_v42 = vpack.c.bf16 %v5296_v37, %v5291_v2  ;;  %v3812_v16 = vpack.c.bf16 %v5322_v19, %v5317_v30 }
 0x2a7   : > { %3763 = vmatprep.subr.bf16.mxu1 %v4153_v27  ;;  %3793 = vmatprep.subr.bf16.mxu0 %v4153_v27  ;;  %v2353_v26 = vand.u32 4294901760, %v2352_v8  ;;  %v3815_v43 = vpack.c.bf16 %v5371_v28, %v5360_v49  ;;  %v3818_v53 = vpack.c.bf16 %v5402_v9, %v5399_v56  ;;  %v3821_v38 = vpack.c.bf16 %v5416_v25, %v5408_v51 }
 0x2a8   : > { %v3794_v55 = vpack.c.bf16 %v2346_v32, %v2339_v20  ;;  %v2360_v34 = vand.u32 4294901760, %v2359_v31  ;;  %v5769_v5 = vand.u32 4294901760, %v5317_v30  ;;  %v5771_v15 = vand.u32 4294901760, %v5360_v49 }
 0x2a9   : > { %v5775_v30 = vand.u32 4294901760, %v5408_v51 }
 0x2aa   : > { %3765 = vmatpush3.bf16.msra.mxu1 %v5433_v50  ;;  %3795 = vmatpush3.bf16.msra.mxu0 %v3794_v55  ;;  %v3797_v48 = vpack.c.bf16 %v2360_v34, %v2353_v26  ;;  %v3014_v55 = vld [vmem:[#allocation5] ss:$0 sm:$0xff] }
 0x2ab   : > { %3766 = vmatprep.subr.bf16.mxu1 %v4153_v27  ;;  %3796 = vmatprep.subr.bf16.mxu0 %v4153_v27 }
 0x2ae   : > { %3768 = vmatpush3.bf16.msra.mxu1 %v5449_v23  ;;  %3798 = vmatpush3.bf16.msra.mxu0 %v3797_v48 }
 0x2af   : > { %3769 = vmatprep.subr.bf16.mxu1 %v4153_v27  ;;  %3799 = vmatprep.subr.bf16.mxu0 %v4153_v27 }
 0x2b2   : > { %3771 = vmatpush3.bf16.msra.mxu1 %v5457_v60 }
 0x2b3   : > { %3772 = vmatprep.subr.bf16.mxu1 %v4153_v27 }
 0x2b6   : > { %3774 = vmatpush3.bf16.msra.mxu1 %v5464_v58 }
 0x313   : > { %v1150_v46 = vpop.permute.xlu1 %1149  ;;  %v1148_v17 = vpop.permute.xlu0 %1147 }
 0x314   : > { %v1152_v20 = vmax.f32 %v1146_v45, %v1150_v46  ;;  %v1151_v32 = vmax.f32 %v1145_v39, %v1148_v17 }
 0x316   : > { %v1154_v8 = vrot.slane %v1152_v20, 2  ;;  %v1153_v31 = vrot.slane %v1151_v32, 2 }
 0x318   : > { %v1156_v26 = vsel %vm1155_vm2, %v1153_v31, %v1154_v8  ;;  %v1157_v34 = vsel %vm1155_vm2, %v1154_v8, %v1153_v31 }
 0x319   : > { %v1158_v48 = vmax.f32 %v1151_v32, %v1156_v26  ;;  %v1159_v44 = vmax.f32 %v1152_v20, %v1157_v34  ;;  %v3800_v32 = vpack.c.bf16 %v5128_v29, %v5123_v33  ;;  %v5766_v33 = vand.u32 4294901760, %v5267_v57 }
 0x31a   : > { %v5772_v57 = vand.u32 4294901760, %v5371_v28 }
 0x31b   : > { %v2123_v6 = vmul.f32 %v3014_v55, %v1158_v48  ;;  %v2124_v12 = vmul.f32 %v3014_v55, %v1159_v44  ;;  %v3854_v29 = vpack.c.bf16 %v5766_v33, %v2281_v54 }
 0x31c   : > { %v3863_v54 = vpack.c.bf16 %v5772_v57, %v5771_v15 }
 0x31d   : > { %v2132_v52 = vadd.f32 %v3015_v63, %v2123_v6  ;;  %v2133_v7 = vadd.f32 %v3015_v63, %v2124_v12 }
 0x31f   : > { %v2134_v21 = vmul.f32 %v2132_v52, %v5136_v59  ;;  %v2135_v45 = vmul.f32 %v2133_v7, %v5144_v35 }
 0x321   : > { %v2136_v62 = vadd.f32 %v2135_v45, %v2134_v21 }
 0x323   : > { %v2137_v39 = vrot.slane %v2136_v62, 4 }
 0x325   : > { %v2138_v46 = vadd.f32 %v2137_v39, %v2136_v62 }
 0x327   : > { %v2139_v17 = vrot.slane %v2138_v46, 2 }
 0x329   : > { %v2140_v40 = vadd.f32 %v2139_v17, %v2138_v46 }
 0x32b   : > { %v2141_v10 = vrot.slane %v2140_v40, 1 }
 0x32d   : > { %v2142_v0 = vadd.f32 %v2141_v10, %v2140_v40  ;;  %v3851_v40 = vpack.c.bf16 %v2274_v18, %v2267_v11  ;;  %v5770_v11 = vand.u32 4294901760, %v5322_v19  ;;  %v5776_v19 = vand.u32 4294901760, %v5416_v25 }
 0x32e   : > { %v2818_v25 = vsub.s32 0, %v5007_v3 }
 0x32f   : > { %v5488_v20 = vand.u32 4294901760, %v2142_v0  ;;  %v3860_v18 = vpack.c.bf16 %v5770_v11, %v5769_v5  ;;  %v3869_v6 = vpack.c.bf16 %v5776_v19, %v5775_v30 }
 0x331   : > { %v2241_v44 = vsub.f32 %v2142_v0, %v5488_v20  ;;  %3417 = vmatmul.mubr.f32.vlgmr.msra.gmra.mrb[4].mxu0 %v5488_v20  ;;  %v3848_v0 = vpack.c.bf16 %v2260_v22, %v2253_v36  ;;  %v5767_v36 = vand.u32 4294901760, %v5291_v2  ;;  %v5768_v22 = vand.u32 4294901760, %v5296_v37 }
 0x332   : > { %3801 = vmatpush3.bf16.msra.mxu0 %v3800_v32  ;;  %3451 = vmatprep.mubr.msk.f32.mxu0 %vm4154_vm1, %v4150_v24  ;;  %v5773_v2 = vand.u32 4294901760, %v5399_v56  ;;  %v5774_v37 = vand.u32 4294901760, %v5402_v9 }
 0x333   : > { %3802 = vmatprep.subr.bf16.mxu0 %v4153_v27  ;;  %v2242_v59 = vand.u32 4294901760, %v2241_v44  ;;  %v3857_v4 = vpack.c.bf16 %v5768_v22, %v5767_v36 }
 0x334   : > { %v3866_v7 = vpack.c.bf16 %v5774_v37, %v5773_v2 }
 0x335   : > { %v2243_v35 = vsub.f32 %v2241_v44, %v2242_v59 }
 0x336   : > { %3804 = vmatpush3.bf16.msra.mxu0 %v3803_v1  ;;  %v2815_v1 = vld [vmem:[%s4392_s25 + $0x10] sm:$0xf] }
 0x337   : > { %3805 = vmatprep.subr.bf16.mxu0 %v4153_v27  ;;  %v2244_v10 = vand.u32 4294901760, %v2243_v35 }
 0x339   : > { %3382 = vmatmul.mubr.f32.vlgmr.msra.gmra.mrb[20].mxu1 %v2244_v10 }
 0x33a   : > { %3807 = vmatpush3.bf16.msra.mxu0 %v3806_v41 }
 0x33b   : > { %3808 = vmatprep.subr.bf16.mxu0 %v4153_v27 }
 0x33e   : > { %3810 = vmatpush3.bf16.msra.mxu0 %v3809_v42 }
 0x33f   : > { %3811 = vmatprep.subr.bf16.mxu0 %v4153_v27 }
 0x342   : > { %3813 = vmatpush3.bf16.msra.mxu0 %v3812_v16 }
 0x343   : > { %3814 = vmatprep.subr.bf16.mxu0 %v4153_v27 }
 0x346   : > { %3816 = vmatpush3.bf16.msra.mxu0 %v3815_v43 }
 0x347   : > { %3817 = vmatprep.subr.bf16.mxu0 %v4153_v27 }
 0x34a   : > { %3819 = vmatpush3.bf16.msra.mxu0 %v3818_v53 }
 0x34b   : > { %3820 = vmatprep.subr.bf16.mxu0 %v4153_v27 }
 0x34e   : > { %3822 = vmatpush3.bf16.msra.mxu0 %v3821_v38 }
 0x34f   : > { %3823 = vmatprep.subr.bf16.mxu0 %v4153_v27 }
 0x351   : > { %3452 = vmatmul.mubr.f32.vlgmr.msra.gmra.mrb[4].mxu0 %v2241_v44 }
 0x352   : > { %3825 = vmatpush3.bf16.msra.mxu0 %v5312_v13  ;;  %3486 = vmatprep.mubr.msk.f32.mxu0 %vm4154_vm1, %v4150_v24 }
 0x353   : > { %3826 = vmatprep.subr.bf16.mxu0 %v4153_v27 }
 0x356   : > { %3828 = vmatpush3.bf16.msra.mxu0 %v5349_v61 }
 0x357   : > { %3829 = vmatprep.subr.bf16.mxu0 %v4153_v27 }
 0x35a   : > { %3831 = vmatpush3.bf16.msra.mxu0 %v5389_v14 }
 0x35b   : > { %3832 = vmatprep.subr.bf16.mxu0 %v4153_v27 }
 0x35e   : > { %3834 = vmatpush3.bf16.msra.mxu0 %v5414_v47 }
 0x35f   : > { %3835 = vmatprep.subr.bf16.mxu0 %v4153_v27 }
 0x362   : > { %3837 = vmatpush3.bf16.msra.mxu0 %v5433_v50 }
 0x363   : > { %3838 = vmatprep.subr.bf16.mxu0 %v4153_v27 }
 0x366   : > { %3840 = vmatpush3.bf16.msra.mxu0 %v5449_v23 }
 0x367   : > { %3841 = vmatprep.subr.bf16.mxu0 %v4153_v27 }
 0x36a   : > { %3843 = vmatpush3.bf16.msra.mxu0 %v5457_v60 }
 0x36b   : > { %3844 = vmatprep.subr.bf16.mxu0 %v4153_v27 }
 0x36e   : > { %3846 = vmatpush3.bf16.msra.mxu0 %v5464_v58 }
 0x36f   : > { %3847 = vmatprep.subr.bf16.mxu0 %v4153_v27 }
 0x371   : > { %3487 = vmatmul.mubr.f32.vlgmr.msra.gmra.mrb[4].mxu0 %v2242_v59 }
 0x372   : > { %3849 = vmatpush3.bf16.msra.mxu0 %v3848_v0  ;;  %3521 = vmatprep.mubr.msk.f32.mxu0 %vm4154_vm1, %v4150_v24 }
 0x373   : > { %3850 = vmatprep.subr.bf16.mxu0 %v4153_v27 }
 0x376   : > { %3852 = vmatpush3.bf16.msra.mxu0 %v3851_v40 }
 0x377   : > { %3853 = vmatprep.subr.bf16.mxu0 %v4153_v27 }
 0x37a   : > { %3855 = vmatpush3.bf16.msra.mxu0 %v3854_v29 }
 0x37b   : > { %3856 = vmatprep.subr.bf16.mxu0 %v4153_v27 }
 0x37e   : > { %3858 = vmatpush3.bf16.msra.mxu0 %v3857_v4 }
 0x37f   : > { %3859 = vmatprep.subr.bf16.mxu0 %v4153_v27 }
 0x382   : > { %3861 = vmatpush3.bf16.msra.mxu0 %v3860_v18 }
 0x383   : > { %3862 = vmatprep.subr.bf16.mxu0 %v4153_v27 }
 0x386   : > { %3864 = vmatpush3.bf16.msra.mxu0 %v3863_v54 }
 0x387   : > { %3865 = vmatprep.subr.bf16.mxu0 %v4153_v27 }
 0x38a   : > { %3867 = vmatpush3.bf16.msra.mxu0 %v3866_v7 }
 0x38b   : > { %3868 = vmatprep.subr.bf16.mxu0 %v4153_v27 }
 0x38e   : > { %3870 = vmatpush3.bf16.msra.mxu0 %v3869_v6 }
 0x38f   : > { %3871 = vmatprep.subr.bf16.mxu0 %v4153_v27 }
 0x391   : > { %3522 = vmatmul.mubr.f32.vlgmr.msra.gmra.mrb[4].mxu0 %v5488_v20 }
 0x392   : > { %3873 = vmatpush3.bf16.msra.mxu0 %v5312_v13  ;;  %3556 = vmatprep.mubr.msk.f32.mxu0 %vm4154_vm1, %v4150_v24 }
 0x393   : > { %3874 = vmatprep.subr.bf16.mxu0 %v4153_v27 }
 0x396   : > { %3876 = vmatpush3.bf16.msra.mxu0 %v5349_v61 }
 0x397   : > { %3877 = vmatprep.subr.bf16.mxu0 %v4153_v27 }
 0x39a   : > { %3879 = vmatpush3.bf16.msra.mxu0 %v5389_v14 }
 0x39b   : > { %3880 = vmatprep.subr.bf16.mxu0 %v4153_v27 }
 0x39e   : > { %3882 = vmatpush3.bf16.msra.mxu0 %v5414_v47 }
 0x39f   : > { %3883 = vmatprep.subr.bf16.mxu0 %v4153_v27 }
 0x3a2   : > { %3885 = vmatpush3.bf16.msra.mxu0 %v5433_v50 }
 0x3a3   : > { %3886 = vmatprep.subr.bf16.mxu0 %v4153_v27 }
 0x3a6   : > { %3888 = vmatpush3.bf16.msra.mxu0 %v5449_v23  ;;  %v2813_v23 = vld [vmem:[%s4392_s25] sm:$0xff] }
 0x3a7   : > { %3889 = vmatprep.subr.bf16.mxu0 %v4153_v27 }
 0x3aa   : > { %3891 = vmatpush3.bf16.msra.mxu0 %v5457_v60  ;;  %v2814_v60 = vld [vmem:[%s4392_s25 + $0x8] sm:$0xff] }
 0x3ab   : > { %3892 = vmatprep.subr.bf16.mxu0 %v4153_v27 }
 0x3ae   : > { %3894 = vmatpush3.bf16.msra.mxu0 %v5464_v58 }
 0x3b1   : > { %3557 = vmatmul.mubr.f32.vlgmr.msra.gmra.mrb[4].mxu0 %v5488_v20 }
 0x40c   : > { %v2246_v24 = vpop.f32.mrb[20].mxu1 }
 0x40d   : > { %v3383_v13 = vpop.f32.mrb[21].mxu1 }
 0x484   : > { %v2796_v51 = vpop.f32.mrb[4].mxu0 }
 0x485   : > { %v3895_v61 = vadd.f32 %v2796_v51, %v2246_v24  ;;  %v3558_v49 = vpop.f32.mrb[5].mxu0 }
 0x487   : > { %v2801_v28 = vsel %vm2800_vm3, %v3895_v61, -inf }
 0x488   : > { %2802 = vmax.xlane.f32.xlu0 %v2801_v28 }
 0x515   : > { %v2803_v52 = vpop.xlane.xlu0 %2802 }
 0x516   : > { %v2804_v14 = vsub.f32 %v3895_v61, %v2803_v52 }
 0x518   : > { %v2805_v56 = vmul.f32 1.442695, %v2804_v14 }
 0x51a   : > { %3975 = vpow2.f32 %v2805_v56 }
 0x524   : > { %v3976_v27 = vpop.eup %3975 }
 0x525   : > { %v2807_v9 = vsel %vm2800_vm3, %v3976_v27, 0.0 }
 0x526   : > { %2808 = vadd.xlane.f32.xlu1 %v2807_v9 }
 0x5b3   : > { %v2809_v12 = vpop.xlane.xlu1 %2808 }
 0x5b4   : > { %3977 = vrcp.f32 %v2809_v12 }
 0x5be   : > { %v3978_v47 = vpop.eup %3977 }
 0x5bf   : > { %v2811_v63 = vmul.f32 32.0, %v3978_v47 }
 0x5c1   : > { %v2812_v50 = vmul.f32 %v3976_v27, %v2811_v63 }
 0x5c3   : > { %v2819_v58 = vrot.slane %v2812_v50, %v2818_v25 }
 0x5c5   : > { %v2820_v41 = vmul.f32 %v2819_v58, %v2813_v23  ;;  %v2821_v42 = vmul.f32 %v2819_v58, %v2814_v60  ;;  %v2822_v16 = vmul.f32 %v2819_v58, %v2815_v1 }
 0x5c7   : > { %2823 = vst [vmem:[%s475_s24] sm:$0xff] %v2820_v41  ;;  %2824 = vst [vmem:[%s475_s24 + $0x8] sm:$0xff] %v2821_v42 }
 0x5c8   : > { %2825 = vst [vmem:[%s475_s24 + $0x10] sm:$0xf] %v2822_v16 }
 0x5c9 PF: > { %s24_s17 = sadd.s32 1, %s4137_s17  }
 0x5ca   : > { %p21_p6 = scmp.ge.s32.totalorder %s24_s17, 4  }
 0x5cc   :  { %23 = sbr.rel (!%p21_p6) target bundleno = 3 (0x3), region = 118 }
 0x5d3   :  { %2847 = vsyncpa [#allocation4], 1 }
 0x5d4   :  { %2849 = vsyncpa [#allocation4 + $0x1], 1 }
 0x5d5   :  { %2850 = vsyncpa [#allocation6], 1 }
 0x5d6   :  { %2851 = vsyncpa [#allocation9], 1 }

</bundles_post_ra>
